<compile_context>
chip_gen: v7x
topology: tpu7x:2x2x1
jax: 0.10.0
libtpu: 0.0.40
codegen_flags: <defaults>
</compile_context>

<pallas_src>
import jax
import jax.numpy as jnp
from jax.experimental import pallas as pl
from jax.experimental.pallas import tpu as pltpu


def _round_up(n, m):
    return (n + m - 1) // m * m


# ---------------------------------------------------------------------------
# Pallas kernels
# ---------------------------------------------------------------------------
def fingerprint_kernel_fused(x_ref, wf_ref, bf_ref, w2_ref, b2_ref, out_ref):
    """x @ (Wv_blockdiag @ Wc @ W1) + b_fused -> LeakyReLU -> @ W2 + b2 -> LeakyReLU."""
    x = x_ref[...]                                                    # (bb, D) f32
    h = jnp.dot(x.astype(wf_ref.dtype), wf_ref[...],
                preferred_element_type=jnp.float32) + bf_ref[...]
    h = jnp.where(h >= 0, h, 0.01 * h)
    h = jnp.dot(h.astype(w2_ref.dtype), w2_ref[...],
                preferred_element_type=jnp.float32) + b2_ref[...]
    out_ref[...] = jnp.where(h >= 0, h, 0.01 * h)


def fingerprint_kernel_exact(x_ref, wv_ref, bv_ref, wc_ref, bc_ref,
                             w1_ref, b1_ref, w2_ref, b2_ref, out_ref):
    """Unfused f32 path (bit-exact vs the module's math), kept for validation."""
    x = x_ref[...]
    h = jnp.dot(x.astype(wv_ref.dtype), wv_ref[...],
                preferred_element_type=jnp.float32) + bv_ref[...]
    h = jnp.dot(h.astype(wc_ref.dtype), wc_ref[...],
                preferred_element_type=jnp.float32) + bc_ref[...]
    h = jnp.dot(h.astype(w1_ref.dtype), w1_ref[...],
                preferred_element_type=jnp.float32) + b1_ref[...]
    h = jnp.where(h >= 0, h, 0.01 * h)
    h = jnp.dot(h.astype(w2_ref.dtype), w2_ref[...],
                preferred_element_type=jnp.float32) + b2_ref[...]
    out_ref[...] = jnp.where(h >= 0, h, 0.01 * h)


def _batch_tile(B):
    if B <= 256:
        return B                                  # one tile: small-B / DMA-bound regime
    # >= 2 tiles so the "parallel" axis can shard across v7x's two TensorCores;
    # cap at 512 rows (~5 MB VMEM working set, fits all generations).
    return min(512, _round_up(pl.cdiv(B, 2), 8))


def fingerprint_forward(x, kp):
    B, D = x.shape
    fused = "wf" in kp
    if fused:
        kernel = fingerprint_kernel_fused
        args = (x, kp["wf"], kp["bf"], kp["w2"], kp["b2"])
    else:
        kernel = fingerprint_kernel_exact
        args = (x, kp["wv"], kp["bv"], kp["wc"], kp["bc"],
                kp["w1"], kp["b1"], kp["w2"], kp["b2"])
    out_dim = kp["w2"].shape[1]                   # natural (unpadded) output width

    bb = _batch_tile(B)
    grid = (pl.cdiv(B, bb),)

    x_spec = pl.BlockSpec((bb, D), lambda i: (i, 0))
    # Grid-invariant weights/biases: whole-array blocks, single-buffered.
    w_specs = [pl.BlockSpec(a.shape, lambda i: (0, 0),
                            pipeline_mode=pl.Buffered(1))
               for a in args[1:]]

    return pl.pallas_call(
        kernel,
        out_shape=jax.ShapeDtypeStruct((B, out_dim), jnp.float32),
        grid=grid,
        in_specs=[x_spec] + w_specs,
        out_specs=pl.BlockSpec((bb, out_dim), lambda i: (i, 0)),
        compiler_params=pltpu.CompilerParams(
            dimension_semantics=("parallel",),
            vmem_limit_bytes=32 * 1024 * 1024),
    )(*args)


# ---------------------------------------------------------------------------
# Deterministic parameter construction (mirrors nn.Linear shapes / init range)
# ---------------------------------------------------------------------------
def _torch_linear(key, fan_in, fan_out):
    kw, kb = jax.random.split(key)
    bound = 1.0 / (fan_in ** 0.5)
    w = jax.random.uniform(kw, (fan_out, fan_in), jnp.float32, -bound, bound)  # torch (out,in)
    b = jax.random.uniform(kb, (fan_out,), jnp.float32, -bound, bound)
    return w, b


def make_ref_params(key, *, batches, each_batch_dim, hidden=1500):
    """Faithful (unpadded, per-head) parameters in (in, out) layout."""
    e = each_batch_dim
    D = batches * e
    keys = jax.random.split(key, 3 * batches + 3)

    wqs, bqs, wks, bks, wvs, bvs = [], [], [], [], [], []
    for i in range(batches):
        wq, bq = _torch_linear(keys[3 * i + 0], e, e)
        wk, bk = _torch_linear(keys[3 * i + 1], e, e)
        wv, bv = _torch_linear(keys[3 * i + 2], e, e)
        wqs.append(wq.T); bqs.append(bq)
        wks.append(wk.T); bks.append(bk)
        wvs.append(wv.T); bvs.append(bv)

    wc, bc = _torch_linear(keys[3 * batches + 0], D, D)
    w1, b1 = _torch_linear(keys[3 * batches + 1], D, hidden)
    w2, b2 = _torch_linear(keys[3 * batches + 2], hidden, e)

    return dict(
        wq=jnp.stack(wqs), bq=jnp.stack(bqs),
        wk=jnp.stack(wks), bk=jnp.stack(bks),
        wv=jnp.stack(wvs), bv=jnp.stack(bvs),
        wc=wc.T, bc=bc,
        w1=w1.T, b1=b1,
        w2=w2.T, b2=b2,
    )


def pack_kernel_params(p, *, batches, each_batch_dim,
                       weight_dtype=jnp.float32, fuse=True):
    """Layout plumbing for the kernel: block-diag Wv, 128-aligned hidden
    padding, natural 32-wide output, optional offline wv->wc->w1 fold and
    optional bf16 weight storage (biases stay f32)."""
    e = each_batch_dim
    D = batches * e
    hidden = p["w1"].shape[1]
    hidden_p = _round_up(hidden, 128)             # 1500 -> 1536

    # Block-diagonal Wv so all heads run as one lane-dense matmul (exact zeros
    # in the off-diagonal blocks).
    wv_bd = jnp.zeros((D, D), jnp.float32)
    for i in range(batches):
        wv_bd = wv_bd.at[i * e:(i + 1) * e, i * e:(i + 1) * e].set(p["wv"][i])
    bv = p["bv"].reshape(1, D)
    bc = p["bc"].reshape(1, D)

    w1p = jnp.zeros((D, hidden_p), jnp.float32).at[:, :hidden].set(p["w1"])
    b1p = jnp.zeros((1, hidden_p), jnp.float32).at[:, :hidden].set(p["b1"])
    w2p = jnp.zeros((hidden_p, e), jnp.float32).at[:hidden, :].set(p["w2"])
    b2p = p["b2"].reshape(1, e)

    wd = weight_dtype
    if fuse:
        # No nonlinearity between Wv, Wc, W1 -> fold them offline (f32).
        wf = wv_bd @ p["wc"] @ w1p                           # (D, hidden_p)
        bf = (bv @ p["wc"] + bc) @ w1p + b1p                 # (1, hidden_p)
        return dict(wf=wf.astype(wd), bf=bf, w2=w2p.astype(wd), b2=b2p)

    return dict(
        wv=wv_bd.astype(wd), bv=bv,
        wc=p["wc"].astype(wd), bc=bc,
        w1=w1p.astype(wd), b1=b1p,
        w2=w2p.astype(wd), b2=b2p,
    )


# ---------------------------------------------------------------------------
# Pure-JAX reference (mirrors the PyTorch forward exactly, incl. q/k/softmax)
# ---------------------------------------------------------------------------
def reference_forward(x, p, *, batches, each_batch_dim):
    e = each_batch_dim
    d_k = float(e) ** (-0.5)
    heads = []
    for i in range(batches):
        xi = x[:, i * e:(i + 1) * e]
        q = xi @ p["wq"][i] + p["bq"][i]
        k = xi @ p["wk"][i] + p["bk"][i]
        v = xi @ p["wv"][i] + p["bv"][i]
        s = jnp.sum(q * k, axis=-1, keepdims=True) * d_k
        heads.append(jax.nn.softmax(s, axis=-1) * v)
    h = jnp.concatenate(heads, axis=-1)
    h = h @ p["wc"] + p["bc"]
    h = jax.nn.leaky_relu(h @ p["w1"] + p["b1"], 0.01)
    h = jax.nn.leaky_relu(h @ p["w2"] + p["b2"], 0.01)
    return h


if __name__ == "__main__":
    # shapes consistent with the module: input_data_dim = batches * each_batch_dim
    batches = 4
    each_batch_dim = 32
    input_data_dim = batches * each_batch_dim       # 128
    hidden = 1500
    B = 8

    key = jax.random.PRNGKey(0)
    kx, kparam, kx2 = jax.random.split(key, 3)
    x = jax.random.normal(kx, (B, input_data_dim), jnp.float32)
    ref_params = make_ref_params(kparam, batches=batches,
                                 each_batch_dim=each_batch_dim, hidden=hidden)
    ref = reference_forward(x, ref_params, batches=batches,
                            each_batch_dim=each_batch_dim)

    # --- unfused f32 path: bit-exact vs the module's math ----------------------
    kp_exact = pack_kernel_params(ref_params, batches=batches,
                                  each_batch_dim=each_batch_dim, fuse=False)
    out_exact = jax.block_until_ready(fingerprint_forward(x, kp_exact))
    assert out_exact.shape == (B, each_batch_dim)
    assert jnp.allclose(out_exact, ref, rtol=1e-5, atol=1e-5), "exact f32 mismatch"

    # --- fused f32 path (wv/wc/w1 folded offline): rounding-changing, tiny err -
    kp_fused = pack_kernel_params(ref_params, batches=batches,
                                  each_batch_dim=each_batch_dim, fuse=True)
    out_fused = jax.block_until_ready(fingerprint_forward(x, kp_fused))
    assert out_fused.shape == (B, each_batch_dim)
    assert jnp.allclose(out_fused, ref, rtol=1e-3, atol=1e-3), "fused f32 diverged"

    # --- fused bf16 weights + bf16 matmul operands (native MXU rate) -----------
    kp_bf16 = pack_kernel_params(ref_params, batches=batches,
                                 each_batch_dim=each_batch_dim, fuse=True,
                                 weight_dtype=jnp.bfloat16)
    out_bf = jax.block_until_ready(fingerprint_forward(x, kp_bf16))
    assert out_bf.shape == (B, each_batch_dim)
    assert bool(jnp.all(jnp.isfinite(out_bf)))
    assert jnp.allclose(out_bf, ref, rtol=1e-1, atol=1e-1), "bf16 path diverged"

    # --- multi-tile / parallel-axis path (grid length 2) -----------------------
    B2 = 384
    x2 = jax.random.normal(kx2, (B2, input_data_dim), jnp.float32)
    ref2 = reference_forward(x2, ref_params, batches=batches,
                             each_batch_dim=each_batch_dim)
    out2 = jax.block_until_ready(fingerprint_forward(x2, kp_fused))
    assert out2.shape == (B2, each_batch_dim)
    assert jnp.allclose(out2, ref2, rtol=1e-3, atol=1e-3), "tiled fused path diverged"

    print("KERNEL_OK")
</pallas_src>

<mosaic_0001>
module attributes {stable_mosaic.version = 11 : i64} {
  func.func @fingerprint_kernel_exact(%arg0: i32, %arg1: memref<8x128xf32, #tpu.memory_space<vmem>>, %arg2: memref<128x128xf32, #tpu.memory_space<vmem>>, %arg3: memref<1x128xf32, #tpu.memory_space<vmem>>, %arg4: memref<128x128xf32, #tpu.memory_space<vmem>>, %arg5: memref<1x128xf32, #tpu.memory_space<vmem>>, %arg6: memref<128x1536xf32, #tpu.memory_space<vmem>>, %arg7: memref<1x1536xf32, #tpu.memory_space<vmem>>, %arg8: memref<1536x32xf32, #tpu.memory_space<vmem>>, %arg9: memref<1x32xf32, #tpu.memory_space<vmem>>, %arg10: memref<8x32xf32, #tpu.memory_space<vmem>>) attributes {dimension_semantics = [#tpu.dimension_semantics<parallel>], iteration_bounds = array<i64: 1>, scalar_prefetch = 0 : i64, scratch_operands = 0 : i64, tpu.core_type = #tpu.core_type<tc>, window_params = [{transform_indices = @transform_0, window_bounds = array<i64: 8, 128>}, {pipeline_mode = #tpu.pipeline_mode<synchronous>, transform_indices = @transform_1, window_bounds = array<i64: 128, 128>}, {pipeline_mode = #tpu.pipeline_mode<synchronous>, transform_indices = @transform_2, window_bounds = array<i64: 1, 128>}, {pipeline_mode = #tpu.pipeline_mode<synchronous>, transform_indices = @transform_3, window_bounds = array<i64: 128, 128>}, {pipeline_mode = #tpu.pipeline_mode<synchronous>, transform_indices = @transform_4, window_bounds = array<i64: 1, 128>}, {pipeline_mode = #tpu.pipeline_mode<synchronous>, transform_indices = @transform_5, window_bounds = array<i64: 128, 1536>}, {pipeline_mode = #tpu.pipeline_mode<synchronous>, transform_indices = @transform_6, window_bounds = array<i64: 1, 1536>}, {pipeline_mode = #tpu.pipeline_mode<synchronous>, transform_indices = @transform_7, window_bounds = array<i64: 1536, 32>}, {pipeline_mode = #tpu.pipeline_mode<synchronous>, transform_indices = @transform_8, window_bounds = array<i64: 1, 32>}, {transform_indices = @transform_9, window_bounds = array<i64: 8, 32>}]} {
    %c0 = arith.constant 0 : index
    %c0_0 = arith.constant 0 : index
    %0 = vector.load %arg1[%c0, %c0_0] : memref<8x128xf32, #tpu.memory_space<vmem>>, vector<8x128xf32>
    %c0_1 = arith.constant 0 : index
    %c0_2 = arith.constant 0 : index
    %1 = vector.load %arg2[%c0_1, %c0_2] : memref<128x128xf32, #tpu.memory_space<vmem>>, vector<128x128xf32>
    %cst = arith.constant dense<0.000000e+00> : vector<8x128xf32>
    %2 = tpu.matmul %0, %1, %cst {dimension_numbers = #tpu.dot_dimension_numbers<[1], [0], [0], [1], [0, 0, 1, 1], [], []>} : vector<8x128xf32>, vector<128x128xf32>, vector<8x128xf32> -> vector<8x128xf32>
    %c0_3 = arith.constant 0 : index
    %c0_4 = arith.constant 0 : index
    %3 = vector.load %arg3[%c0_3, %c0_4] : memref<1x128xf32, #tpu.memory_space<vmem>>, vector<1x128xf32>
    %4 = vector.broadcast %3 : vector<1x128xf32> to vector<8x128xf32>
    %5 = arith.addf %2, %4 : vector<8x128xf32>
    %c0_5 = arith.constant 0 : index
    %c0_6 = arith.constant 0 : index
    %6 = vector.load %arg4[%c0_5, %c0_6] : memref<128x128xf32, #tpu.memory_space<vmem>>, vector<128x128xf32>
    %cst_7 = arith.constant dense<0.000000e+00> : vector<8x128xf32>
    %7 = tpu.matmul %5, %6, %cst_7 {dimension_numbers = #tpu.dot_dimension_numbers<[1], [0], [0], [1], [0, 0, 1, 1], [], []>} : vector<8x128xf32>, vector<128x128xf32>, vector<8x128xf32> -> vector<8x128xf32>
    %c0_8 = arith.constant 0 : index
    %c0_9 = arith.constant 0 : index
    %8 = vector.load %arg5[%c0_8, %c0_9] : memref<1x128xf32, #tpu.memory_space<vmem>>, vector<1x128xf32>
    %9 = vector.broadcast %8 : vector<1x128xf32> to vector<8x128xf32>
    %10 = arith.addf %7, %9 : vector<8x128xf32>
    %c0_10 = arith.constant 0 : index
    %c0_11 = arith.constant 0 : index
    %11 = vector.load %arg6[%c0_10, %c0_11] : memref<128x1536xf32, #tpu.memory_space<vmem>>, vector<128x1536xf32>
    %cst_12 = arith.constant dense<0.000000e+00> : vector<8x1536xf32>
    %12 = tpu.matmul %10, %11, %cst_12 {dimension_numbers = #tpu.dot_dimension_numbers<[1], [0], [0], [1], [0, 0, 1, 1], [], []>} : vector<8x128xf32>, vector<128x1536xf32>, vector<8x1536xf32> -> vector<8x1536xf32>
    %c0_13 = arith.constant 0 : index
    %c0_14 = arith.constant 0 : index
    %13 = vector.load %arg7[%c0_13, %c0_14] : memref<1x1536xf32, #tpu.memory_space<vmem>>, vector<1x1536xf32>
    %14 = vector.broadcast %13 : vector<1x1536xf32> to vector<8x1536xf32>
    %15 = arith.addf %12, %14 : vector<8x1536xf32>
    %cst_15 = arith.constant 0.000000e+00 : f32
    %16 = vector.broadcast %cst_15 : f32 to vector<8x1536xf32>
    %17 = arith.cmpf oge, %15, %16 : vector<8x1536xf32>
    %cst_16 = arith.constant 0.00999999977 : f32
    %18 = vector.broadcast %cst_16 : f32 to vector<8x1536xf32>
    %19 = arith.mulf %18, %15 : vector<8x1536xf32>
    %20 = arith.select %17, %15, %19 : vector<8x1536xi1>, vector<8x1536xf32>
    %c0_17 = arith.constant 0 : index
    %c0_18 = arith.constant 0 : index
    %21 = vector.load %arg8[%c0_17, %c0_18] : memref<1536x32xf32, #tpu.memory_space<vmem>>, vector<1536x32xf32>
    %cst_19 = arith.constant dense<0.000000e+00> : vector<8x32xf32>
    %22 = tpu.matmul %20, %21, %cst_19 {dimension_numbers = #tpu.dot_dimension_numbers<[1], [0], [0], [1], [0, 0, 1, 1], [], []>} : vector<8x1536xf32>, vector<1536x32xf32>, vector<8x32xf32> -> vector<8x32xf32>
    %c0_20 = arith.constant 0 : index
    %c0_21 = arith.constant 0 : index
    %23 = vector.load %arg9[%c0_20, %c0_21] : memref<1x32xf32, #tpu.memory_space<vmem>>, vector<1x32xf32>
    %24 = vector.broadcast %23 : vector<1x32xf32> to vector<8x32xf32>
    %25 = arith.addf %22, %24 : vector<8x32xf32>
    %cst_22 = arith.constant 0.000000e+00 : f32
    %26 = vector.broadcast %cst_22 : f32 to vector<8x32xf32>
    %27 = arith.cmpf oge, %25, %26 : vector<8x32xf32>
    %cst_23 = arith.constant 0.00999999977 : f32
    %28 = vector.broadcast %cst_23 : f32 to vector<8x32xf32>
    %29 = arith.mulf %28, %25 : vector<8x32xf32>
    %30 = arith.select %27, %25, %29 : vector<8x32xi1>, vector<8x32xf32>
    %c0_24 = arith.constant 0 : index
    %c0_25 = arith.constant 0 : index
    %31 = vector.load %arg10[%c0_24, %c0_25] : memref<8x32xf32, #tpu.memory_space<vmem>>, vector<8x32xf32>
    tpu.vector_store %arg10[%c0_24, %c0_25], %30 {strides = array<i32>} : memref<8x32xf32, #tpu.memory_space<vmem>>, vector<8x32xf32>,
    return
  }
  func.func @transform_0(%arg0: i32) -> (i32, i32) {
    %c0_i32 = arith.constant 0 : i32
    %c0_i32_0 = arith.constant 0 : i32
    return %arg0, %c0_i32 : i32, i32
  }
  func.func @transform_1(%arg0: i32) -> (i32, i32) {
    %c0_i32 = arith.constant 0 : i32
    %c0_i32_0 = arith.constant 0 : i32
    %c0_i32_1 = arith.constant 0 : i32
    return %c0_i32, %c0_i32_0 : i32, i32
  }
  func.func @transform_2(%arg0: i32) -> (i32, i32) {
    %c0_i32 = arith.constant 0 : i32
    %c0_i32_0 = arith.constant 0 : i32
    %c0_i32_1 = arith.constant 0 : i32
    return %c0_i32, %c0_i32_0 : i32, i32
  }
  func.func @transform_3(%arg0: i32) -> (i32, i32) {
    %c0_i32 = arith.constant 0 : i32
    %c0_i32_0 = arith.constant 0 : i32
    %c0_i32_1 = arith.constant 0 : i32
    return %c0_i32, %c0_i32_0 : i32, i32
  }
  func.func @transform_4(%arg0: i32) -> (i32, i32) {
    %c0_i32 = arith.constant 0 : i32
    %c0_i32_0 = arith.constant 0 : i32
    %c0_i32_1 = arith.constant 0 : i32
    return %c0_i32, %c0_i32_0 : i32, i32
  }
  func.func @transform_5(%arg0: i32) -> (i32, i32) {
    %c0_i32 = arith.constant 0 : i32
    %c0_i32_0 = arith.constant 0 : i32
    %c0_i32_1 = arith.constant 0 : i32
    return %c0_i32, %c0_i32_0 : i32, i32
  }
  func.func @transform_6(%arg0: i32) -> (i32, i32) {
    %c0_i32 = arith.constant 0 : i32
    %c0_i32_0 = arith.constant 0 : i32
    %c0_i32_1 = arith.constant 0 : i32
    return %c0_i32, %c0_i32_0 : i32, i32
  }
  func.func @transform_7(%arg0: i32) -> (i32, i32) {
    %c0_i32 = arith.constant 0 : i32
    %c0_i32_0 = arith.constant 0 : i32
    %c0_i32_1 = arith.constant 0 : i32
    return %c0_i32, %c0_i32_0 : i32, i32
  }
  func.func @transform_8(%arg0: i32) -> (i32, i32) {
    %c0_i32 = arith.constant 0 : i32
    %c0_i32_0 = arith.constant 0 : i32
    %c0_i32_1 = arith.constant 0 : i32
    return %c0_i32, %c0_i32_0 : i32, i32
  }
  func.func @transform_9(%arg0: i32) -> (i32, i32) {
    %c0_i32 = arith.constant 0 : i32
    %c0_i32_0 = arith.constant 0 : i32
    return %arg0, %c0_i32 : i32, i32
  }
}

</mosaic_0001>

<bundles_post_ra>
// kernel: tpu_custom_call.1
= control target key start
LH: loop header
LB: loop body
LE: loop exit
PB: predicated region body
PF: predicated region fallthrough
CT: control target
= control target key end

     0   :  { %v2353_v3 = vmov 0.0|0.0   ;;  %vm2354_vm0 = vmmov 0   ;;  %v2355_v6 = vmov 0.0   ;;  %s3757_s0 = inlined_call_operand.vmem [shape: f32[8,128], index: 0, kind: input, shape index: {}]   ;;  %s3758_s1 = inlined_call_operand.vmem [shape: f32[128,128], index: 1, kind: input, shape index: {}]   ;;  %s3759_s2 = inlined_call_operand.vmem [shape: f32[1,128], index: 2, kind: input, shape index: {}]   ;;  %s3760_s3 = inlined_call_operand.vmem [shape: f32[128,128], index: 3, kind: input, shape index: {}]   ;;  %s3761_s4 = inlined_call_operand.vmem [shape: f32[1,128], index: 4, kind: input, shape index: {}]   ;;  %s3762_s5 = inlined_call_operand.vmem [shape: f32[128,1536], index: 5, kind: input, shape index: {}]   ;;  %s3763_s6 = inlined_call_operand.vmem [shape: f32[1,1536], index: 6, kind: input, shape index: {}]   ;;  %s3764_s7 = inlined_call_operand.vmem [shape: f32[1536,32], index: 7, kind: input, shape index: {}]   ;;  %s3765_s8 = inlined_call_operand.vmem [shape: f32[1,32], index: 8, kind: input, shape index: {}]   ;;  %s3766_s9 = inlined_call_operand.hbm [shape: f32[8,32], index: 9, kind: output, shape index: {}]  }
   0x1   :  { %v34_v0 = vld [vmem:[%s3758_s1] sm:$0xff]  ;;  %v35_v1 = vld [vmem:[%s3758_s1 + $0x8] sm:$0xff]  ;;  %v36_v2 = vld [vmem:[%s3758_s1 + $0x10] sm:$0xff]  ;;  %1893 = vmatprep.subr.bf16.mxu0 %v2353_v3  ;;  %1855 = vmatprep.mubr.msk.f32.mxu0 %vm2354_vm0, %v2355_v6 }
   0x2   :  { %v1894_v4 = vpack.c.bf16 %v35_v1, %v34_v0  ;;  %v37_v5 = vld [vmem:[%s3758_s1 + $0x18] sm:$0xff]  ;;  %1917 = vmatprep.subr.bf16.mxu1 %v2353_v3  ;;  %1890 = vmatprep.mubr.msk.f32.mxu1 %vm2354_vm0, %v2355_v6  ;;  %v38_v8 = vld [vmem:[%s3758_s1 + $0x20] sm:$0xff]  ;;  %v39_v9 = vld [vmem:[%s3758_s1 + $0x28] sm:$0xff] }
   0x3   :  { %v1897_v7 = vpack.c.bf16 %v37_v5, %v36_v2  ;;  %v127_v10 = vld [vmem:[%s3760_s3] sm:$0xff]  ;;  %v128_v11 = vld [vmem:[%s3760_s3 + $0x8] sm:$0xff]  ;;  %v129_v12 = vld [vmem:[%s3760_s3 + $0x10] sm:$0xff]  ;;  %v1900_v14 = vpack.c.bf16 %v39_v9, %v38_v8 }
   0x4   :  { %1895 = vmatpush3.bf16.msra.mxu0 %v1894_v4  ;;  %v130_v13 = vld [vmem:[%s3760_s3 + $0x18] sm:$0xff]  ;;  %v1918_v15 = vpack.c.bf16 %v128_v11, %v127_v10  ;;  %v40_v16 = vld [vmem:[%s3758_s1 + $0x30] sm:$0xff]  ;;  %v131_v19 = vld [vmem:[%s3760_s3 + $0x20] sm:$0xff] }
   0x5   :  { %1896 = vmatprep.subr.bf16.mxu0 %v2353_v3  ;;  %v41_v17 = vld [vmem:[%s3758_s1 + $0x38] sm:$0xff]  ;;  %v1921_v18 = vpack.c.bf16 %v130_v13, %v129_v12  ;;  %v132_v20 = vld [vmem:[%s3760_s3 + $0x28] sm:$0xff] }
   0x6   :  { %1919 = vmatpush3.bf16.msra.mxu1 %v1918_v15 }
   0x7   :  { %1920 = vmatprep.subr.bf16.mxu1 %v2353_v3 }
   0x8   :  { %1898 = vmatpush3.bf16.msra.mxu0 %v1897_v7 }
   0x9   :  { %1899 = vmatprep.subr.bf16.mxu0 %v2353_v3 }
   0xa   :  { %14 = vsyncpa [#allocation3], 0  ;;  %v1903_v21 = vpack.c.bf16 %v41_v17, %v40_v16  ;;  %v42_v22 = vld [vmem:[%s3758_s1 + $0x40] sm:$0xff]  ;;  %v43_v23 = vld [vmem:[%s3758_s1 + $0x48] sm:$0xff]  ;;  %1922 = vmatpush3.bf16.msra.mxu1 %v1921_v18  ;;  %v1924_v24 = vpack.c.bf16 %v132_v20, %v131_v19  ;;  %vm1560_vm14 = vcmask 261120  }
   0xb   :  { %1923 = vmatprep.subr.bf16.mxu1 %v2353_v3  ;;  %v133_v25 = vld [vmem:[%s3760_s3 + $0x30] sm:$0xff]  ;;  %v134_v26 = vld [vmem:[%s3760_s3 + $0x38] sm:$0xff]  ;;  %v1906_v27 = vpack.c.bf16 %v43_v23, %v42_v22  ;;  %v135_v31 = vld [vmem:[%s3760_s3 + $0x40] sm:$0xff] }
   0xc   :  { %1901 = vmatpush3.bf16.msra.mxu0 %v1900_v14  ;;  %v44_v28 = vld [vmem:[%s3758_s1 + $0x50] sm:$0xff]  ;;  %v45_v29 = vld [vmem:[%s3758_s1 + $0x58] sm:$0xff]  ;;  %v1927_v30 = vpack.c.bf16 %v134_v26, %v133_v25  ;;  %v136_v32 = vld [vmem:[%s3760_s3 + $0x48] sm:$0xff] }
   0xd   :  { %1902 = vmatprep.subr.bf16.mxu0 %v2353_v3  ;;  %v1909_v33 = vpack.c.bf16 %v45_v29, %v44_v28  ;;  %v46_v34 = vld [vmem:[%s3758_s1 + $0x60] sm:$0xff]  ;;  %v47_v35 = vld [vmem:[%s3758_s1 + $0x68] sm:$0xff]  ;;  %v1930_v36 = vpack.c.bf16 %v136_v32, %v135_v31  ;;  %v137_v37 = vld [vmem:[%s3760_s3 + $0x50] sm:$0xff] }
   0xe   :  { %1925 = vmatpush3.bf16.msra.mxu1 %v1924_v24  ;;  %v138_v38 = vld [vmem:[%s3760_s3 + $0x58] sm:$0xff]  ;;  %v1912_v39 = vpack.c.bf16 %v47_v35, %v46_v34  ;;  %v48_v40 = vld [vmem:[%s3758_s1 + $0x70] sm:$0xff]  ;;  %v139_v43 = vld [vmem:[%s3760_s3 + $0x60] sm:$0xff] }
   0xf   :  { %1926 = vmatprep.subr.bf16.mxu1 %v2353_v3  ;;  %v49_v41 = vld [vmem:[%s3758_s1 + $0x78] sm:$0xff]  ;;  %v1933_v42 = vpack.c.bf16 %v138_v38, %v137_v37  ;;  %v140_v44 = vld [vmem:[%s3760_s3 + $0x68] sm:$0xff]  ;;  %v33_v47 = vld [vmem:[%s3757_s0] sm:$0xff] }
  0x10   :  { %1904 = vmatpush3.bf16.msra.mxu0 %v1903_v21  ;;  %v1915_v45 = vpack.c.bf16 %v49_v41, %v48_v40  ;;  %v1936_v46 = vpack.c.bf16 %v140_v44, %v139_v43  ;;  %v141_v48 = vld [vmem:[%s3760_s3 + $0x70] sm:$0xff]  ;;  %v142_v49 = vld [vmem:[%s3760_s3 + $0x78] sm:$0xff]  ;;  %v221_v51 = vld [vmem:[%s3762_s5 + $0x8] sm:$0xff] }
  0x11   :  { %1905 = vmatprep.subr.bf16.mxu0 %v2353_v3  ;;  %v1939_v50 = vpack.c.bf16 %v142_v49, %v141_v48  ;;  %v233_v52 = vld [vmem:[%s3762_s5 + $0x68] sm:$0xff]  ;;  %v223_v53 = vld [vmem:[%s3762_s5 + $0x18] sm:$0xff]  ;;  %v220_v56 = vld [vmem:[%s3762_s5] sm:$0xff] }
  0x12   :  { %1928 = vmatpush3.bf16.msra.mxu1 %v1927_v30  ;;  %v1941_v54 = vpack.c.bf16 %v233_v52, %v221_v51  ;;  %v235_v55 = vld [vmem:[%s3762_s5 + $0x78] sm:$0xff]  ;;  %v232_v57 = vld [vmem:[%s3762_s5 + $0x60] sm:$0xff]  ;;  %v245_v60 = vld [vmem:[%s3762_s5 + $0xc8] sm:$0xff] }
  0x13   :  { %1929 = vmatprep.subr.bf16.mxu1 %v2353_v3  ;;  %v1973_v58 = vpack.c.bf16 %v235_v55, %v223_v53  ;;  %v1943_v59 = vpack.c.bf16 %v232_v57, %v220_v56  ;;  %v257_v61 = vld [vmem:[%s3762_s5 + $0x128] sm:$0xff]  ;;  %v244_v63 = vld [vmem:[%s3762_s5 + $0xc0] sm:$0xff]  ;;  %v234_v40 = vld [vmem:[%s3762_s5 + $0x70] sm:$0xff] }
  0x14   :  { %1907 = vmatpush3.bf16.msra.mxu0 %v1906_v27  ;;  %v1945_v62 = vpack.c.bf16 %v257_v61, %v245_v60  ;;  %v256_v0 = vld [vmem:[%s3762_s5 + $0x120] sm:$0xff]  ;;  %v269_v2 = vld [vmem:[%s3762_s5 + $0x188] sm:$0xff]  ;;  %v259_v43 = vld [vmem:[%s3762_s5 + $0x138] sm:$0xff] }
  0x15   :  { %1908 = vmatprep.subr.bf16.mxu0 %v2353_v3  ;;  %v1947_v1 = vpack.c.bf16 %v256_v0, %v244_v63  ;;  %v268_v5 = vld [vmem:[%s3762_s5 + $0x180] sm:$0xff]  ;;  %v293_v9 = vld [vmem:[%s3762_s5 + $0x248] sm:$0xff]  ;;  %v246_v49 = vld [vmem:[%s3762_s5 + $0xd0] sm:$0xff] }
  0x16   :  { %1931 = vmatpush3.bf16.msra.mxu1 %v1930_v36  ;;  %v280_v7 = vld [vmem:[%s3762_s5 + $0x1e0] sm:$0xff]  ;;  %v305_v10 = vld [vmem:[%s3762_s5 + $0x2a8] sm:$0xff]  ;;  %v271_v51 = vld [vmem:[%s3762_s5 + $0x198] sm:$0xff] }
  0x17   :  { %1932 = vmatprep.subr.bf16.mxu1 %v2353_v3  ;;  %v1951_v8 = vpack.c.bf16 %v280_v7, %v268_v5  ;;  %v1953_v11 = vpack.c.bf16 %v305_v10, %v293_v9  ;;  %v292_v12 = vld [vmem:[%s3762_s5 + $0x240] sm:$0xff]  ;;  %v317_v15 = vld [vmem:[%s3762_s5 + $0x308] sm:$0xff]  ;;  %v283_v52 = vld [vmem:[%s3762_s5 + $0x1f8] sm:$0xff] }
  0x18   :  { %1910 = vmatpush3.bf16.msra.mxu0 %v1909_v33  ;;  %v304_v13 = vld [vmem:[%s3762_s5 + $0x2a0] sm:$0xff]  ;;  %v329_v16 = vld [vmem:[%s3762_s5 + $0x368] sm:$0xff]  ;;  %v270_v55 = vld [vmem:[%s3762_s5 + $0x190] sm:$0xff] }
  0x19   :  { %1911 = vmatprep.subr.bf16.mxu0 %v2353_v3  ;;  %v1955_v14 = vpack.c.bf16 %v304_v13, %v292_v12  ;;  %v1957_v17 = vpack.c.bf16 %v329_v16, %v317_v15  ;;  %v316_v18 = vld [vmem:[%s3762_s5 + $0x300] sm:$0xff]  ;;  %v341_v21 = vld [vmem:[%s3762_s5 + $0x3c8] sm:$0xff]  ;;  %v282_v56 = vld [vmem:[%s3762_s5 + $0x1f0] sm:$0xff] }
  0x1a   :  { %1934 = vmatpush3.bf16.msra.mxu1 %v1933_v42  ;;  %v328_v19 = vld [vmem:[%s3762_s5 + $0x360] sm:$0xff]  ;;  %v353_v22 = vld [vmem:[%s3762_s5 + $0x428] sm:$0xff]  ;;  %v247_v42 = vld [vmem:[%s3762_s5 + $0xd8] sm:$0xff] }
  0x1b   :  { %1935 = vmatprep.subr.bf16.mxu1 %v2353_v3  ;;  %v1959_v20 = vpack.c.bf16 %v328_v19, %v316_v18  ;;  %v1961_v23 = vpack.c.bf16 %v353_v22, %v341_v21  ;;  %v340_v24 = vld [vmem:[%s3762_s5 + $0x3c0] sm:$0xff]  ;;  %v365_v27 = vld [vmem:[%s3762_s5 + $0x488] sm:$0xff]  ;;  %v1977_v48 = vpack.c.bf16 %v259_v43, %v247_v42  ;;  %v295_v57 = vld [vmem:[%s3762_s5 + $0x258] sm:$0xff] }
  0x1c   :  { %1913 = vmatpush3.bf16.msra.mxu0 %v1912_v39  ;;  %v352_v25 = vld [vmem:[%s3762_s5 + $0x420] sm:$0xff]  ;;  %v377_v28 = vld [vmem:[%s3762_s5 + $0x4e8] sm:$0xff]  ;;  %v222_v39 = vld [vmem:[%s3762_s5 + $0x10] sm:$0xff] }
  0x1d   :  { %1914 = vmatprep.subr.bf16.mxu0 %v2353_v3  ;;  %v1963_v26 = vpack.c.bf16 %v352_v25, %v340_v24  ;;  %v1965_v29 = vpack.c.bf16 %v377_v28, %v365_v27  ;;  %v364_v30 = vld [vmem:[%s3762_s5 + $0x480] sm:$0xff]  ;;  %v389_v33 = vld [vmem:[%s3762_s5 + $0x548] sm:$0xff]  ;;  %v294_v61 = vld [vmem:[%s3762_s5 + $0x250] sm:$0xff] }
  0x1e   :  { %1937 = vmatpush3.bf16.msra.mxu1 %v1936_v46  ;;  %v376_v31 = vld [vmem:[%s3762_s5 + $0x4e0] sm:$0xff]  ;;  %v401_v34 = vld [vmem:[%s3762_s5 + $0x5a8] sm:$0xff]  ;;  %v319_v63 = vld [vmem:[%s3762_s5 + $0x318] sm:$0xff] }
  0x1f   :  { %1938 = vmatprep.subr.bf16.mxu1 %v2353_v3  ;;  %v281_v3 = vld [vmem:[%s3762_s5 + $0x1e8] sm:$0xff]  ;;  %v1967_v32 = vpack.c.bf16 %v376_v31, %v364_v30  ;;  %v1969_v35 = vpack.c.bf16 %v401_v34, %v389_v33  ;;  %v388_v36 = vld [vmem:[%s3762_s5 + $0x540] sm:$0xff]  ;;  %v331_v0 = vld [vmem:[%s3762_s5 + $0x378] sm:$0xff] }
  0x20   :  { %1916 = vmatpush3.bf16.msra.mxu0 %v1915_v45  ;;  %v1949_v4 = vpack.c.bf16 %v281_v3, %v269_v2  ;;  %v400_v37 = vld [vmem:[%s3762_s5 + $0x5a0] sm:$0xff]  ;;  %v1975_v45 = vpack.c.bf16 %v234_v40, %v222_v39  ;;  %v1989_v2 = vpack.c.bf16 %v331_v0, %v319_v63  ;;  %v318_v3 = vld [vmem:[%s3762_s5 + $0x310] sm:$0xff]  ;;  %v343_v5 = vld [vmem:[%s3762_s5 + $0x3d8] sm:$0xff] }
  0x21   :  { %1942 = vmatprep.subr.bf16.mxu0 %v1941_v54  ;;  %v1971_v38 = vpack.c.bf16 %v400_v37, %v388_v36  ;;  %v1576_v41 = vld [vmem:[%s3759_s2] ss:$0 sm:$0xff]  ;;  %v1981_v54 = vpack.c.bf16 %v283_v52, %v271_v51  ;;  %v355_v7 = vld [vmem:[%s3762_s5 + $0x438] sm:$0xff]  ;;  %v342_v10 = vld [vmem:[%s3762_s5 + $0x3d0] sm:$0xff] }
  0x22   :  { %1940 = vmatpush3.bf16.msra.mxu1 %v1939_v50  ;;  %v258_v50 = vld [vmem:[%s3762_s5 + $0x130] sm:$0xff]  ;;  %v1993_v9 = vpack.c.bf16 %v355_v7, %v343_v5  ;;  %v367_v12 = vld [vmem:[%s3762_s5 + $0x498] sm:$0xff]  ;;  %v225_v25 = vld [vmem:[%s3762_s5 + $0x28] sm:$0xff] }
  0x23   :  { %1856 = vmatmul.mubr.f32.vlgmr.msra.gmra.mrb[0].mxu0 %v33_v47  ;;  %1974 = vmatprep.subr.bf16.mxu1 %v1973_v58  ;;  %v1979_v53 = vpack.c.bf16 %v258_v50, %v246_v49  ;;  %v307_v58 = vld [vmem:[%s3762_s5 + $0x2b8] sm:$0xff]  ;;  %v366_v16 = vld [vmem:[%s3762_s5 + $0x490] sm:$0xff]  ;;  %v1577_v31 = vld [vmem:[%s3761_s4] ss:$0 sm:$0xff] }
  0x24   :  { %540 = vmatprep.mubr.f32.mxu0 %v2355_v6  ;;  %1944 = vmatpush1.bf16.msra.mxu0 %v1943_v59  ;;  %v1983_v59 = vpack.c.bf16 %v282_v56, %v270_v55  ;;  %v1985_v60 = vpack.c.bf16 %v307_v58, %v295_v57  ;;  %v379_v13 = vld [vmem:[%s3762_s5 + $0x4f8] sm:$0xff]  ;;  %v390_v22 = vld [vmem:[%s3762_s5 + $0x550] sm:$0xff]  ;;  %v236_v33 = vld [vmem:[%s3762_s5 + $0x80] sm:$0xff] }
  0x25   :  { %1946 = vmatprep.subr.bf16.mxu0 %v1945_v62  ;;  %v306_v62 = vld [vmem:[%s3762_s5 + $0x2b0] sm:$0xff]  ;;  %v1997_v15 = vpack.c.bf16 %v379_v13, %v367_v12  ;;  %v391_v18 = vld [vmem:[%s3762_s5 + $0x558] sm:$0xff]  ;;  %v249_v36 = vld [vmem:[%s3762_s5 + $0xe8] sm:$0xff] }
  0x26   :  { %v403_v19 = vld [vmem:[%s3762_s5 + $0x5b8] sm:$0xff]  ;;  %v226_v34 = vld [vmem:[%s3762_s5 + $0x30] sm:$0xff]  ;;  %v261_v37 = vld [vmem:[%s3762_s5 + $0x148] sm:$0xff] }
  0x27   :  { %v2001_v21 = vpack.c.bf16 %v403_v19, %v391_v18  ;;  %v227_v27 = vld [vmem:[%s3762_s5 + $0x38] sm:$0xff]  ;;  %v248_v43 = vld [vmem:[%s3762_s5 + $0xe0] sm:$0xff]  ;;  %v250_v49 = vld [vmem:[%s3762_s5 + $0xf0] sm:$0xff] }
  0x28   :  { %1948 = vmatpush1.bf16.msra.mxu0 %v1947_v1  ;;  %v1987_v1 = vpack.c.bf16 %v306_v62, %v294_v61  ;;  %v263_v39 = vld [vmem:[%s3762_s5 + $0x158] sm:$0xff]  ;;  %v262_v50 = vld [vmem:[%s3762_s5 + $0x150] sm:$0xff]  ;;  %v273_v51 = vld [vmem:[%s3762_s5 + $0x1a8] sm:$0xff] }
  0x29   :  { %1950 = vmatprep.subr.bf16.mxu0 %v1949_v4  ;;  %v330_v4 = vld [vmem:[%s3762_s5 + $0x370] sm:$0xff]  ;;  %v285_v52 = vld [vmem:[%s3762_s5 + $0x208] sm:$0xff]  ;;  %v2043_v56 = vpack.c.bf16 %v262_v50, %v250_v49  ;;  %v272_v57 = vld [vmem:[%s3762_s5 + $0x1a0] sm:$0xff] }
  0x2a   :  { %v284_v58 = vld [vmem:[%s3762_s5 + $0x200] sm:$0xff]  ;;  %v274_v61 = vld [vmem:[%s3762_s5 + $0x1b0] sm:$0xff]  ;;  %v297_v63 = vld [vmem:[%s3762_s5 + $0x268] sm:$0xff] }
  0x2b   :  { %v286_v62 = vld [vmem:[%s3762_s5 + $0x210] sm:$0xff]  ;;  %v309_v0 = vld [vmem:[%s3762_s5 + $0x2c8] sm:$0xff]  ;;  %v296_v5 = vld [vmem:[%s3762_s5 + $0x260] sm:$0xff] }
  0x2c   :  { %1952 = vmatpush1.bf16.msra.mxu0 %v1951_v8  ;;  %v1991_v8 = vpack.c.bf16 %v330_v4, %v318_v3  ;;  %v2015_v3 = vpack.c.bf16 %v284_v58, %v272_v57  ;;  %v2047_v4 = vpack.c.bf16 %v286_v62, %v274_v61  ;;  %v308_v7 = vld [vmem:[%s3762_s5 + $0x2c0] sm:$0xff]  ;;  %v321_v12 = vld [vmem:[%s3762_s5 + $0x328] sm:$0xff] }
  0x2d   :  { %1954 = vmatprep.subr.bf16.mxu0 %v1953_v11  ;;  %v354_v11 = vld [vmem:[%s3762_s5 + $0x430] sm:$0xff]  ;;  %v333_v13 = vld [vmem:[%s3762_s5 + $0x388] sm:$0xff]  ;;  %v320_v18 = vld [vmem:[%s3762_s5 + $0x320] sm:$0xff] }
  0x2e   :  { %v332_v19 = vld [vmem:[%s3762_s5 + $0x380] sm:$0xff]  ;;  %v393_v49 = vld [vmem:[%s3762_s5 + $0x568] sm:$0xff] }
  0x2f   :  { %v405_v50 = vld [vmem:[%s3762_s5 + $0x5c8] sm:$0xff] }
  0x30   :  { %1956 = vmatpush1.bf16.msra.mxu0 %v1955_v14  ;;  %v1995_v14 = vpack.c.bf16 %v354_v11, %v342_v10  ;;  %v298_v10 = vld [vmem:[%s3762_s5 + $0x270] sm:$0xff]  ;;  %v2033_v57 = vpack.c.bf16 %v405_v50, %v393_v49  ;;  %v229_v61 = vld [vmem:[%s3762_s5 + $0x48] sm:$0xff]  ;;  %v339_v49 = vld [vmem:[%s3762_s5 + $0x3b8] sm:$0xff] }
  0x31   :  { %1958 = vmatprep.subr.bf16.mxu0 %v1957_v17  ;;  %v378_v17 = vld [vmem:[%s3762_s5 + $0x4f0] sm:$0xff]  ;;  %v241_v62 = vld [vmem:[%s3762_s5 + $0xa8] sm:$0xff] }
  0x32   :  { %v310_v11 = vld [vmem:[%s3762_s5 + $0x2d0] sm:$0xff] }
  0x34   :  { %1960 = vmatpush1.bf16.msra.mxu0 %v1959_v20  ;;  %v1999_v20 = vpack.c.bf16 %v378_v17, %v366_v16  ;;  %v2019_v16 = vpack.c.bf16 %v308_v7, %v296_v5  ;;  %v2051_v17 = vpack.c.bf16 %v310_v11, %v298_v10  ;;  %v2069_v5 = vpack.c.bf16 %v241_v62, %v229_v61  ;;  %v253_v10 = vld [vmem:[%s3762_s5 + $0x108] sm:$0xff]  ;;  %v363_v61 = vld [vmem:[%s3762_s5 + $0x478] sm:$0xff] }
  0x35   :  { %1962 = vmatprep.subr.bf16.mxu0 %v1961_v23  ;;  %v402_v23 = vld [vmem:[%s3762_s5 + $0x5b0] sm:$0xff]  ;;  %v265_v11 = vld [vmem:[%s3762_s5 + $0x168] sm:$0xff] }
  0x36   :  { %v2003_v24 = vpack.c.bf16 %v402_v23, %v390_v22  ;;  %v322_v22 = vld [vmem:[%s3762_s5 + $0x330] sm:$0xff] }
  0x37   :  { %v334_v23 = vld [vmem:[%s3762_s5 + $0x390] sm:$0xff] }
  0x38   :  { %1964 = vmatpush1.bf16.msra.mxu0 %v1963_v26  ;;  %v237_v26 = vld [vmem:[%s3762_s5 + $0x88] sm:$0xff] }
  0x39   :  { %1966 = vmatprep.subr.bf16.mxu0 %v1965_v29  ;;  %v2005_v28 = vpack.c.bf16 %v237_v26, %v225_v25  ;;  %v239_v29 = vld [vmem:[%s3762_s5 + $0x98] sm:$0xff]  ;;  %v357_v25 = vld [vmem:[%s3762_s5 + $0x448] sm:$0xff] }
  0x3a   :  { %v2037_v30 = vpack.c.bf16 %v239_v29, %v227_v27  ;;  %v347_v26 = vld [vmem:[%s3762_s5 + $0x3f8] sm:$0xff]  ;;  %v2055_v29 = vpack.c.bf16 %v334_v23, %v322_v22  ;;  %v277_v22 = vld [vmem:[%s3762_s5 + $0x1c8] sm:$0xff] }
  0x3b   :  { %v359_v27 = vld [vmem:[%s3762_s5 + $0x458] sm:$0xff]  ;;  %v289_v23 = vld [vmem:[%s3762_s5 + $0x228] sm:$0xff] }
  0x3c   :  { %1968 = vmatpush1.bf16.msra.mxu0 %v1967_v32  ;;  %v224_v32 = vld [vmem:[%s3762_s5 + $0x20] sm:$0xff] }
  0x3d   :  { %1970 = vmatprep.subr.bf16.mxu0 %v1969_v35  ;;  %v238_v35 = vld [vmem:[%s3762_s5 + $0x90] sm:$0xff] }
  0x3e   :  { %v2039_v42 = vpack.c.bf16 %v238_v35, %v226_v34  ;;  %v346_v34 = vld [vmem:[%s3762_s5 + $0x3f0] sm:$0xff] }
  0x3f   :  { %v358_v35 = vld [vmem:[%s3762_s5 + $0x450] sm:$0xff] }
  0x40   :  { %1972 = vmatpush1.bf16.msra.mxu0 %v1971_v38  ;;  %v251_v38 = vld [vmem:[%s3762_s5 + $0xf8] sm:$0xff] }
  0x41   :  { %2006 = vmatprep.subr.bf16.mxu0 %v2005_v28  ;;  %v2023_v28 = vpack.c.bf16 %v332_v19, %v320_v18  ;;  %v2073_v18 = vpack.c.bf16 %v265_v11, %v253_v10  ;;  %v387_v10 = vld [vmem:[%s3762_s5 + $0x538] sm:$0xff] }
  0xf6   :  { %v123_v44 = vpop.f32.mrb[0].mxu0 }
  0xf7   :  { %v124_v46 = vadd.f32 %v1576_v41, %v123_v44  ;;  %v1857_v47 = vpop.f32.mrb[1].mxu0  ;;  %v2007_v41 = vpack.c.bf16 %v236_v33, %v224_v32  ;;  %v260_v44 = vld [vmem:[%s3762_s5 + $0x140] sm:$0xff]  ;;  %v2057_v33 = vpack.c.bf16 %v359_v27, %v347_v26 }
  0xf8   :  { %v2009_v47 = vpack.c.bf16 %v261_v37, %v249_v36  ;;  %v2011_v55 = vpack.c.bf16 %v260_v44, %v248_v43  ;;  %v369_v36 = vld [vmem:[%s3762_s5 + $0x4a8] sm:$0xff]  ;;  %v380_v43 = vld [vmem:[%s3762_s5 + $0x500] sm:$0xff] }
  0xf9   :  { %1891 = vmatmul.mubr.f32.vlgmr.msra.gmra.mrb[0].mxu1 %v124_v46  ;;  %v381_v37 = vld [vmem:[%s3762_s5 + $0x508] sm:$0xff] }
  0xfa   :  { %1976 = vmatpush1.bf16.msra.mxu1 %v1975_v45  ;;  %611 = vmatprep.mubr.f32.mxu1 %v2355_v6  ;;  %v2029_v44 = vpack.c.bf16 %v381_v37, %v369_v36  ;;  %v303_v36 = vld [vmem:[%s3762_s5 + $0x298] sm:$0xff] }
  0xfb   :  { %1978 = vmatprep.subr.bf16.mxu1 %v1977_v48  ;;  %v2041_v48 = vpack.c.bf16 %v263_v39, %v251_v38  ;;  %v371_v38 = vld [vmem:[%s3762_s5 + $0x4b8] sm:$0xff] }
  0xfc   :  { %v383_v39 = vld [vmem:[%s3762_s5 + $0x518] sm:$0xff] }
  0xfd   :  { %v315_v37 = vld [vmem:[%s3762_s5 + $0x2f8] sm:$0xff] }
  0xfe   :  { %1980 = vmatpush1.bf16.msra.mxu1 %v1979_v53  ;;  %v275_v53 = vld [vmem:[%s3762_s5 + $0x1b8] sm:$0xff] }
  0xff   :  { %1982 = vmatprep.subr.bf16.mxu1 %v1981_v54  ;;  %v287_v54 = vld [vmem:[%s3762_s5 + $0x218] sm:$0xff] }
 0x102   :  { %1984 = vmatpush1.bf16.msra.mxu1 %v1983_v59  ;;  %v2013_v59 = vpack.c.bf16 %v285_v52, %v273_v51  ;;  %v395_v51 = vld [vmem:[%s3762_s5 + $0x578] sm:$0xff] }
 0x103   :  { %1986 = vmatprep.subr.bf16.mxu1 %v1985_v60  ;;  %v2045_v60 = vpack.c.bf16 %v287_v54, %v275_v53  ;;  %v407_v52 = vld [vmem:[%s3762_s5 + $0x5d8] sm:$0xff] }
 0x104   :  { %v2065_v58 = vpack.c.bf16 %v407_v52, %v395_v51  ;;  %v324_v52 = vld [vmem:[%s3762_s5 + $0x340] sm:$0xff] }
 0x106   :  { %1988 = vmatpush1.bf16.msra.mxu1 %v1987_v1  ;;  %v299_v1 = vld [vmem:[%s3762_s5 + $0x278] sm:$0xff] }
 0x107   :  { %1990 = vmatprep.subr.bf16.mxu1 %v1989_v2  ;;  %v311_v2 = vld [vmem:[%s3762_s5 + $0x2d8] sm:$0xff] }
 0x10a   :  { %1992 = vmatpush1.bf16.msra.mxu1 %v1991_v8  ;;  %v2017_v8 = vpack.c.bf16 %v309_v0, %v297_v63  ;;  %v231_v63 = vld [vmem:[%s3762_s5 + $0x58] sm:$0xff] }
 0x10b   :  { %1994 = vmatprep.subr.bf16.mxu1 %v1993_v9  ;;  %v2049_v9 = vpack.c.bf16 %v311_v2, %v299_v1  ;;  %v243_v0 = vld [vmem:[%s3762_s5 + $0xb8] sm:$0xff] }
 0x10c   :  { %v2101_v7 = vpack.c.bf16 %v243_v0, %v231_v63  ;;  %v348_v0 = vld [vmem:[%s3762_s5 + $0x400] sm:$0xff] }
 0x10e   :  { %1996 = vmatpush1.bf16.msra.mxu1 %v1995_v14  ;;  %v323_v14 = vld [vmem:[%s3762_s5 + $0x338] sm:$0xff] }
 0x10f   :  { %1998 = vmatprep.subr.bf16.mxu1 %v1997_v15  ;;  %v335_v15 = vld [vmem:[%s3762_s5 + $0x398] sm:$0xff] }
 0x112   :  { %2000 = vmatpush1.bf16.msra.mxu1 %v1999_v20  ;;  %v2021_v20 = vpack.c.bf16 %v333_v13, %v321_v12  ;;  %v255_v12 = vld [vmem:[%s3762_s5 + $0x118] sm:$0xff] }
 0x113   :  { %2002 = vmatprep.subr.bf16.mxu1 %v2001_v21  ;;  %v2053_v21 = vpack.c.bf16 %v335_v15, %v323_v14  ;;  %v267_v13 = vld [vmem:[%s3762_s5 + $0x178] sm:$0xff] }
 0x114   :  { %v2105_v19 = vpack.c.bf16 %v267_v13, %v255_v12  ;;  %v372_v13 = vld [vmem:[%s3762_s5 + $0x4c0] sm:$0xff] }
 0x116   :  { %2004 = vmatpush1.bf16.msra.mxu1 %v2003_v24  ;;  %v345_v24 = vld [vmem:[%s3762_s5 + $0x3e8] sm:$0xff] }
 0x117   :  { %2038 = vmatprep.subr.bf16.mxu1 %v2037_v30  ;;  %v344_v30 = vld [vmem:[%s3762_s5 + $0x3e0] sm:$0xff]  ;;  %v2025_v32 = vpack.c.bf16 %v357_v25, %v345_v24  ;;  %v279_v24 = vld [vmem:[%s3762_s5 + $0x1d8] sm:$0xff] }
 0x118   :  { %v291_v25 = vld [vmem:[%s3762_s5 + $0x238] sm:$0xff] }
 0x1cc   :  { %v216_v40 = vpop.f32.mrb[0].mxu1 }
 0x1cd   :  { %v2766_v45 = vadd.f32 %v1577_v31, %v216_v40  ;;  %v1892_v46 = vpop.f32.mrb[1].mxu1  ;;  %v356_v31 = vld [vmem:[%s3762_s5 + $0x440] sm:$0xff] }
 0x1ce   :  { %v2027_v40 = vpack.c.bf16 %v356_v31, %v344_v30  ;;  %v2061_v46 = vpack.c.bf16 %v383_v39, %v371_v38  ;;  %v2077_v30 = vpack.c.bf16 %v289_v23, %v277_v22  ;;  %v2109_v31 = vpack.c.bf16 %v291_v25, %v279_v24  ;;  %v411_v22 = vld [vmem:[%s3762_s5 + $0x5f8] sm:$0xff]  ;;  %v396_v25 = vld [vmem:[%s3762_s5 + $0x580] sm:$0xff] }
 0x1cf   :  { %541 = vmatmul.mubr.f32.vlgmr.msra.gmra.mrb[2].mxu0 %v2766_v45  ;;  %612 = vmatmul.mubr.f32.vlgmr.msra.gmra.mrb[2].mxu1 %v2766_v45 }
 0x1d0   :  { %2008 = vmatpush1.bf16.msra.mxu0 %v2007_v41  ;;  %2040 = vmatpush1.bf16.msra.mxu1 %v2039_v42  ;;  %v2059_v41 = vpack.c.bf16 %v358_v35, %v346_v34  ;;  %v368_v42 = vld [vmem:[%s3762_s5 + $0x4a0] sm:$0xff]  ;;  %v301_v34 = vld [vmem:[%s3762_s5 + $0x288] sm:$0xff] }
 0x1d1   :  { %2010 = vmatprep.subr.bf16.mxu0 %v2009_v47  ;;  %2042 = vmatprep.subr.bf16.mxu1 %v2041_v48  ;;  %v370_v47 = vld [vmem:[%s3762_s5 + $0x4b0] sm:$0xff]  ;;  %v2031_v53 = vpack.c.bf16 %v380_v43, %v368_v42  ;;  %v313_v35 = vld [vmem:[%s3762_s5 + $0x2e8] sm:$0xff]  ;;  %v2113_v43 = vpack.c.bf16 %v315_v37, %v303_v36  ;;  %v938_v37 = vld [vmem:[%s3764_s7] sm:$0xff] }
 0x1d2   :  { %682 = vmatprep.mubr.f32.mxu0 %v2355_v6  ;;  %753 = vmatprep.mubr.f32.mxu1 %v2355_v6  ;;  %v382_v48 = vld [vmem:[%s3762_s5 + $0x510] sm:$0xff]  ;;  %v2081_v42 = vpack.c.bf16 %v313_v35, %v301_v34  ;;  %v987_v34 = vld [vmem:[%s3764_s7 + $0x188] sm:$0xff] }
 0x1d3   :  { %v2063_v54 = vpack.c.bf16 %v382_v48, %v370_v47  ;;  %v337_v47 = vld [vmem:[%s3762_s5 + $0x3a8] sm:$0xff]  ;;  %v327_v48 = vld [vmem:[%s3762_s5 + $0x358] sm:$0xff] }
 0x1d4   :  { %2012 = vmatpush1.bf16.msra.mxu0 %v2011_v55  ;;  %2044 = vmatpush1.bf16.msra.mxu1 %v2043_v56  ;;  %v392_v55 = vld [vmem:[%s3762_s5 + $0x560] sm:$0xff] }
 0x1d5   :  { %2014 = vmatprep.subr.bf16.mxu0 %v2013_v59  ;;  %2046 = vmatprep.subr.bf16.mxu1 %v2045_v60  ;;  %v404_v56 = vld [vmem:[%s3762_s5 + $0x5c0] sm:$0xff]  ;;  %v394_v59 = vld [vmem:[%s3762_s5 + $0x570] sm:$0xff] }
 0x1d6   :  { %v406_v60 = vld [vmem:[%s3762_s5 + $0x5d0] sm:$0xff]  ;;  %v2035_v1 = vpack.c.bf16 %v404_v56, %v392_v55  ;;  %v2117_v55 = vpack.c.bf16 %v339_v49, %v327_v48 }
 0x1d7   :  { %v2067_v2 = vpack.c.bf16 %v406_v60, %v394_v59  ;;  %v326_v56 = vld [vmem:[%s3762_s5 + $0x350] sm:$0xff]  ;;  %v361_v59 = vld [vmem:[%s3762_s5 + $0x468] sm:$0xff]  ;;  %v351_v60 = vld [vmem:[%s3762_s5 + $0x418] sm:$0xff] }
 0x1d8   :  { %2016 = vmatpush1.bf16.msra.mxu0 %v2015_v3  ;;  %2048 = vmatpush1.bf16.msra.mxu1 %v2047_v4  ;;  %v228_v3 = vld [vmem:[%s3762_s5 + $0x40] sm:$0xff]  ;;  %v940_v49 = vld [vmem:[%s3764_s7 + $0x10] sm:$0xff] }
 0x1d9   :  { %2018 = vmatprep.subr.bf16.mxu0 %v2017_v8  ;;  %2050 = vmatprep.subr.bf16.mxu1 %v2049_v9  ;;  %v240_v4 = vld [vmem:[%s3762_s5 + $0xa0] sm:$0xff]  ;;  %v230_v8 = vld [vmem:[%s3762_s5 + $0x50] sm:$0xff] }
 0x1da   :  { %v242_v9 = vld [vmem:[%s3762_s5 + $0xb0] sm:$0xff]  ;;  %v2071_v14 = vpack.c.bf16 %v240_v4, %v228_v3  ;;  %v2121_v3 = vpack.c.bf16 %v363_v61, %v351_v60  ;;  %v942_v61 = vld [vmem:[%s3764_s7 + $0x20] sm:$0xff] }
 0x1db   :  { %v2103_v15 = vpack.c.bf16 %v242_v9, %v230_v8  ;;  %v350_v4 = vld [vmem:[%s3762_s5 + $0x410] sm:$0xff]  ;;  %v385_v8 = vld [vmem:[%s3762_s5 + $0x528] sm:$0xff]  ;;  %v375_v9 = vld [vmem:[%s3762_s5 + $0x4d8] sm:$0xff] }
 0x1dc   :  { %2020 = vmatpush1.bf16.msra.mxu0 %v2019_v16  ;;  %2052 = vmatpush1.bf16.msra.mxu1 %v2051_v17  ;;  %v252_v16 = vld [vmem:[%s3762_s5 + $0x100] sm:$0xff] }
 0x1dd   :  { %2022 = vmatprep.subr.bf16.mxu0 %v2021_v20  ;;  %2054 = vmatprep.subr.bf16.mxu1 %v2053_v21  ;;  %v264_v17 = vld [vmem:[%s3762_s5 + $0x160] sm:$0xff]  ;;  %v254_v20 = vld [vmem:[%s3762_s5 + $0x110] sm:$0xff] }
 0x1de   :  { %v266_v21 = vld [vmem:[%s3762_s5 + $0x170] sm:$0xff]  ;;  %v2075_v26 = vpack.c.bf16 %v264_v17, %v252_v16  ;;  %v2125_v16 = vpack.c.bf16 %v387_v10, %v375_v9  ;;  %v945_v10 = vld [vmem:[%s3764_s7 + $0x38] sm:$0xff] }
 0x1df   :  { %v2107_v27 = vpack.c.bf16 %v266_v21, %v254_v20  ;;  %v374_v17 = vld [vmem:[%s3762_s5 + $0x4d0] sm:$0xff]  ;;  %v409_v20 = vld [vmem:[%s3762_s5 + $0x5e8] sm:$0xff]  ;;  %v399_v21 = vld [vmem:[%s3762_s5 + $0x598] sm:$0xff] }
 0x1e0   :  { %2024 = vmatpush1.bf16.msra.mxu0 %v2023_v28  ;;  %2056 = vmatpush1.bf16.msra.mxu1 %v2055_v29  ;;  %v276_v28 = vld [vmem:[%s3762_s5 + $0x1c0] sm:$0xff]  ;;  %v944_v9 = vld [vmem:[%s3764_s7 + $0x30] sm:$0xff] }
 0x1e1   :  { %2026 = vmatprep.subr.bf16.mxu0 %v2025_v32  ;;  %2058 = vmatprep.subr.bf16.mxu1 %v2057_v33  ;;  %v288_v29 = vld [vmem:[%s3762_s5 + $0x220] sm:$0xff]  ;;  %v278_v32 = vld [vmem:[%s3762_s5 + $0x1d0] sm:$0xff] }
 0x1e2   :  { %v290_v33 = vld [vmem:[%s3762_s5 + $0x230] sm:$0xff]  ;;  %v2079_v38 = vpack.c.bf16 %v288_v29, %v276_v28  ;;  %v2129_v28 = vpack.c.bf16 %v411_v22, %v399_v21  ;;  %v946_v21 = vld [vmem:[%s3764_s7 + $0x40] sm:$0xff]  ;;  %v947_v22 = vld [vmem:[%s3764_s7 + $0x48] sm:$0xff] }
 0x1e3   :  { %v2111_v39 = vpack.c.bf16 %v290_v33, %v278_v32  ;;  %v398_v29 = vld [vmem:[%s3762_s5 + $0x590] sm:$0xff]  ;;  %v955_v32 = vld [vmem:[%s3764_s7 + $0x88] sm:$0xff]  ;;  %v986_v33 = vld [vmem:[%s3764_s7 + $0x180] sm:$0xff] }
 0x1e4   :  { %2028 = vmatpush1.bf16.msra.mxu0 %v2027_v40  ;;  %2060 = vmatpush1.bf16.msra.mxu1 %v2059_v41  ;;  %v300_v40 = vld [vmem:[%s3762_s5 + $0x280] sm:$0xff] }
 0x1e5   :  { %2030 = vmatprep.subr.bf16.mxu0 %v2029_v44  ;;  %2062 = vmatprep.subr.bf16.mxu1 %v2061_v46  ;;  %v312_v41 = vld [vmem:[%s3762_s5 + $0x2e0] sm:$0xff]  ;;  %v314_v44 = vld [vmem:[%s3762_s5 + $0x2f0] sm:$0xff]  ;;  %v325_v46 = vld [vmem:[%s3762_s5 + $0x348] sm:$0xff] }
 0x1e6   :  { %v2083_v50 = vpack.c.bf16 %v312_v41, %v300_v40  ;;  %v2165_v40 = vpack.c.bf16 %v987_v34, %v986_v33  ;;  %v970_v41 = vld [vmem:[%s3764_s7 + $0x100] sm:$0xff]  ;;  %v948_v33 = vld [vmem:[%s3764_s7 + $0x50] sm:$0xff]  ;;  %v949_v34 = vld [vmem:[%s3764_s7 + $0x58] sm:$0xff] }
 0x1e8   :  { %2032 = vmatpush1.bf16.msra.mxu0 %v2031_v53  ;;  %2064 = vmatpush1.bf16.msra.mxu1 %v2063_v54  ;;  %v336_v53 = vld [vmem:[%s3762_s5 + $0x3a0] sm:$0xff]  ;;  %v2085_v54 = vpack.c.bf16 %v337_v47, %v325_v46  ;;  %v989_v46 = vld [vmem:[%s3764_s7 + $0x198] sm:$0xff] }
 0x1e9   :  { %2034 = vmatprep.subr.bf16.mxu0 %v2033_v57  ;;  %2066 = vmatprep.subr.bf16.mxu1 %v2065_v58  ;;  %v338_v57 = vld [vmem:[%s3762_s5 + $0x3b0] sm:$0xff]  ;;  %v349_v58 = vld [vmem:[%s3762_s5 + $0x408] sm:$0xff]  ;;  %v2087_v62 = vpack.c.bf16 %v336_v53, %v324_v52 }
 0x1ea   :  { %v2119_v63 = vpack.c.bf16 %v338_v57, %v326_v56  ;;  %v972_v53 = vld [vmem:[%s3764_s7 + $0x110] sm:$0xff]  ;;  %v959_v56 = vld [vmem:[%s3764_s7 + $0xa8] sm:$0xff]  ;;  %v990_v57 = vld [vmem:[%s3764_s7 + $0x1a0] sm:$0xff] }
 0x1ec   :  { %2036 = vmatpush1.bf16.msra.mxu0 %v2035_v1  ;;  %2068 = vmatpush1.bf16.msra.mxu1 %v2067_v2  ;;  %v360_v1 = vld [vmem:[%s3762_s5 + $0x460] sm:$0xff]  ;;  %v2089_v2 = vpack.c.bf16 %v361_v59, %v349_v58  ;;  %v991_v58 = vld [vmem:[%s3764_s7 + $0x1a8] sm:$0xff] }
 0x1ed   :  { %2070 = vmatprep.subr.bf16.mxu0 %v2069_v5  ;;  %2102 = vmatprep.subr.bf16.mxu1 %v2101_v7  ;;  %v362_v5 = vld [vmem:[%s3762_s5 + $0x470] sm:$0xff]  ;;  %v373_v7 = vld [vmem:[%s3762_s5 + $0x4c8] sm:$0xff]  ;;  %v2091_v11 = vpack.c.bf16 %v360_v1, %v348_v0  ;;  %v2173_v0 = vpack.c.bf16 %v991_v58, %v990_v57 }
 0x1ee   :  { %v2123_v12 = vpack.c.bf16 %v362_v5, %v350_v4  ;;  %v975_v1 = vld [vmem:[%s3764_s7 + $0x128] sm:$0xff]  ;;  %v992_v4 = vld [vmem:[%s3764_s7 + $0x1b0] sm:$0xff]  ;;  %v993_v5 = vld [vmem:[%s3764_s7 + $0x1b8] sm:$0xff] }
 0x1ef   :  { %683 = vmatmul.mubr.f32.vlgmr.msra.gmra.mrb[4].mxu0 %v2766_v45  ;;  %754 = vmatmul.mubr.f32.vlgmr.msra.gmra.mrb[4].mxu1 %v2766_v45  ;;  %v952_v57 = vld [vmem:[%s3764_s7 + $0x70] sm:$0xff] }
 0x1f0   :  { %2072 = vmatpush1.bf16.msra.mxu0 %v2071_v14  ;;  %2104 = vmatpush1.bf16.msra.mxu1 %v2103_v15  ;;  %v384_v14 = vld [vmem:[%s3762_s5 + $0x520] sm:$0xff]  ;;  %v2093_v15 = vpack.c.bf16 %v385_v8, %v373_v7 }
 0x1f1   :  { %2074 = vmatprep.subr.bf16.mxu0 %v2073_v18  ;;  %2106 = vmatprep.subr.bf16.mxu1 %v2105_v19  ;;  %v386_v18 = vld [vmem:[%s3762_s5 + $0x530] sm:$0xff]  ;;  %v397_v19 = vld [vmem:[%s3762_s5 + $0x588] sm:$0xff]  ;;  %v2095_v23 = vpack.c.bf16 %v384_v14, %v372_v13  ;;  %v977_v14 = vld [vmem:[%s3764_s7 + $0x138] sm:$0xff] }
 0x1f2   :  { %824 = vmatprep.mubr.f32.mxu0 %v2355_v6  ;;  %895 = vmatprep.mubr.f32.mxu1 %v2355_v6  ;;  %v302_v6 = vld [vmem:[%s3762_s5 + $0x290] sm:$0xff]  ;;  %v2127_v24 = vpack.c.bf16 %v386_v18, %v374_v17  ;;  %v994_v17 = vld [vmem:[%s3764_s7 + $0x1c0] sm:$0xff]  ;;  %v995_v18 = vld [vmem:[%s3764_s7 + $0x1c8] sm:$0xff] }
 0x1f3   :  { %v2115_v51 = vpack.c.bf16 %v314_v44, %v302_v6  ;;  %v957_v6 = vld [vmem:[%s3764_s7 + $0x98] sm:$0xff]  ;;  %v988_v44 = vld [vmem:[%s3764_s7 + $0x190] sm:$0xff] }
 0x1f4   :  { %2076 = vmatpush1.bf16.msra.mxu0 %v2075_v26  ;;  %2108 = vmatpush1.bf16.msra.mxu1 %v2107_v27  ;;  %v408_v26 = vld [vmem:[%s3762_s5 + $0x5e0] sm:$0xff]  ;;  %v2097_v27 = vpack.c.bf16 %v409_v20, %v397_v19  ;;  %v2169_v52 = vpack.c.bf16 %v989_v46, %v988_v44  ;;  %v976_v13 = vld [vmem:[%s3764_s7 + $0x130] sm:$0xff]  ;;  %v2147_v19 = vpack.c.bf16 %v945_v10, %v944_v9 }
 0x1f5   :  { %2078 = vmatprep.subr.bf16.mxu0 %v2077_v30  ;;  %2110 = vmatprep.subr.bf16.mxu1 %v2109_v31  ;;  %v410_v30 = vld [vmem:[%s3762_s5 + $0x5f0] sm:$0xff]  ;;  %v954_v31 = vld [vmem:[%s3764_s7 + $0x80] sm:$0xff]  ;;  %v2099_v35 = vpack.c.bf16 %v408_v26, %v396_v25  ;;  %v2179_v20 = vpack.c.bf16 %v977_v14, %v976_v13  ;;  %v979_v26 = vld [vmem:[%s3764_s7 + $0x148] sm:$0xff] }
 0x1f6   :  { %v2131_v36 = vpack.c.bf16 %v410_v30, %v398_v29  ;;  %v978_v25 = vld [vmem:[%s3764_s7 + $0x140] sm:$0xff]  ;;  %v996_v29 = vld [vmem:[%s3764_s7 + $0x1d0] sm:$0xff]  ;;  %v997_v30 = vld [vmem:[%s3764_s7 + $0x1d8] sm:$0xff] }
 0x1f7   :  { %v950_v44 = vld [vmem:[%s3764_s7 + $0x60] sm:$0xff] }
 0x1f8   :  { %2080 = vmatpush1.bf16.msra.mxu0 %v2079_v38  ;;  %2112 = vmatpush1.bf16.msra.mxu1 %v2111_v39  ;;  %v939_v38 = vld [vmem:[%s3764_s7 + $0x8] sm:$0xff]  ;;  %v2133_v39 = vpack.c.bf16 %v955_v32, %v954_v31  ;;  %v2151_v31 = vpack.c.bf16 %v947_v22, %v946_v21  ;;  %v2183_v32 = vpack.c.bf16 %v979_v26, %v978_v25  ;;  %v1034_v26 = vld [vmem:[%s3764_s7 + $0x300] sm:$0xff] }
 0x1f9   :  { %2082 = vmatprep.subr.bf16.mxu0 %v2081_v42  ;;  %2114 = vmatprep.subr.bf16.mxu1 %v2113_v43  ;;  %v971_v42 = vld [vmem:[%s3764_s7 + $0x108] sm:$0xff]  ;;  %v956_v43 = vld [vmem:[%s3764_s7 + $0x90] sm:$0xff]  ;;  %v2135_v47 = vpack.c.bf16 %v939_v38, %v938_v37  ;;  %v981_v38 = vld [vmem:[%s3764_s7 + $0x158] sm:$0xff] }
 0x1fa   :  { %v2167_v48 = vpack.c.bf16 %v971_v42, %v970_v41  ;;  %v980_v37 = vld [vmem:[%s3764_s7 + $0x150] sm:$0xff]  ;;  %v998_v41 = vld [vmem:[%s3764_s7 + $0x1e0] sm:$0xff]  ;;  %v999_v42 = vld [vmem:[%s3764_s7 + $0x1e8] sm:$0xff] }
 0x1fb   :  { %v1003_v21 = vld [vmem:[%s3764_s7 + $0x208] sm:$0xff] }
 0x1fc   :  { %2084 = vmatpush1.bf16.msra.mxu0 %v2083_v50  ;;  %2116 = vmatpush1.bf16.msra.mxu1 %v2115_v51  ;;  %v941_v50 = vld [vmem:[%s3764_s7 + $0x18] sm:$0xff]  ;;  %v2137_v51 = vpack.c.bf16 %v957_v6, %v956_v43  ;;  %v2155_v43 = vpack.c.bf16 %v949_v34, %v948_v33  ;;  %v2187_v6 = vpack.c.bf16 %v981_v38, %v980_v37 }
 0x1fd   :  { %2086 = vmatprep.subr.bf16.mxu0 %v2085_v54  ;;  %2118 = vmatprep.subr.bf16.mxu1 %v2117_v55  ;;  %v973_v54 = vld [vmem:[%s3764_s7 + $0x118] sm:$0xff]  ;;  %v958_v55 = vld [vmem:[%s3764_s7 + $0xa0] sm:$0xff]  ;;  %v2139_v59 = vpack.c.bf16 %v941_v50, %v940_v49  ;;  %v983_v50 = vld [vmem:[%s3764_s7 + $0x168] sm:$0xff] }
 0x1fe   :  { %v2171_v60 = vpack.c.bf16 %v973_v54, %v972_v53  ;;  %v982_v49 = vld [vmem:[%s3764_s7 + $0x160] sm:$0xff]  ;;  %v1000_v53 = vld [vmem:[%s3764_s7 + $0x1f0] sm:$0xff]  ;;  %v1053_v33 = vld [vmem:[%s3764_s7 + $0x398] sm:$0xff] }
 0x200   :  { %2088 = vmatpush1.bf16.msra.mxu0 %v2087_v62  ;;  %2120 = vmatpush1.bf16.msra.mxu1 %v2119_v63  ;;  %v943_v62 = vld [vmem:[%s3764_s7 + $0x28] sm:$0xff]  ;;  %v2141_v63 = vpack.c.bf16 %v959_v56, %v958_v55  ;;  %v2191_v55 = vpack.c.bf16 %v983_v50, %v982_v49  ;;  %v1001_v56 = vld [vmem:[%s3764_s7 + $0x1f8] sm:$0xff] }
 0x201   :  { %2090 = vmatprep.subr.bf16.mxu0 %v2089_v2  ;;  %2122 = vmatprep.subr.bf16.mxu1 %v2121_v3  ;;  %v960_v2 = vld [vmem:[%s3764_s7 + $0xb0] sm:$0xff]  ;;  %v961_v3 = vld [vmem:[%s3764_s7 + $0xb8] sm:$0xff]  ;;  %v2143_v7 = vpack.c.bf16 %v943_v62, %v942_v61 }
 0x202   :  { %v984_v61 = vld [vmem:[%s3764_s7 + $0x170] sm:$0xff]  ;;  %v985_v62 = vld [vmem:[%s3764_s7 + $0x178] sm:$0xff] }
 0x204   :  { %2092 = vmatpush1.bf16.msra.mxu0 %v2091_v11  ;;  %2124 = vmatpush1.bf16.msra.mxu1 %v2123_v12  ;;  %v2145_v11 = vpack.c.bf16 %v961_v3, %v960_v2  ;;  %v2177_v12 = vpack.c.bf16 %v993_v5, %v992_v4  ;;  %v2195_v2 = vpack.c.bf16 %v985_v62, %v984_v61  ;;  %v1051_v3 = vld [vmem:[%s3764_s7 + $0x388] sm:$0xff]  ;;  %v1024_v62 = vld [vmem:[%s3764_s7 + $0x2b0] sm:$0xff] }
 0x205   :  { %2094 = vmatprep.subr.bf16.mxu0 %v2093_v15  ;;  %2126 = vmatprep.subr.bf16.mxu1 %v2125_v16  ;;  %v962_v15 = vld [vmem:[%s3764_s7 + $0xc0] sm:$0xff]  ;;  %v963_v16 = vld [vmem:[%s3764_s7 + $0xc8] sm:$0xff] }
 0x206   :  { %v1039_v61 = vld [vmem:[%s3764_s7 + $0x328] sm:$0xff] }
 0x208   :  { %2096 = vmatpush1.bf16.msra.mxu0 %v2095_v23  ;;  %2128 = vmatpush1.bf16.msra.mxu1 %v2127_v24  ;;  %v2149_v23 = vpack.c.bf16 %v963_v16, %v962_v15  ;;  %v2181_v24 = vpack.c.bf16 %v995_v18, %v994_v17 }
 0x209   :  { %2098 = vmatprep.subr.bf16.mxu0 %v2097_v27  ;;  %2130 = vmatprep.subr.bf16.mxu1 %v2129_v28  ;;  %v964_v27 = vld [vmem:[%s3764_s7 + $0xd0] sm:$0xff]  ;;  %v965_v28 = vld [vmem:[%s3764_s7 + $0xd8] sm:$0xff] }
 0x20c   :  { %2100 = vmatpush1.bf16.msra.mxu0 %v2099_v35  ;;  %2132 = vmatpush1.bf16.msra.mxu1 %v2131_v36  ;;  %v2153_v35 = vpack.c.bf16 %v965_v28, %v964_v27  ;;  %v2185_v36 = vpack.c.bf16 %v997_v30, %v996_v29  ;;  %v1035_v27 = vld [vmem:[%s3764_s7 + $0x308] sm:$0xff]  ;;  %v1020_v28 = vld [vmem:[%s3764_s7 + $0x290] sm:$0xff] }
 0x20d   :  { %2134 = vmatprep.subr.bf16.mxu0 %v2133_v39  ;;  %2166 = vmatprep.subr.bf16.mxu1 %v2165_v40  ;;  %v966_v39 = vld [vmem:[%s3764_s7 + $0xe0] sm:$0xff]  ;;  %v967_v40 = vld [vmem:[%s3764_s7 + $0xe8] sm:$0xff] }
 0x20e   :  { %v2157_v46 = vpack.c.bf16 %v967_v40, %v966_v39  ;;  %v2231_v39 = vpack.c.bf16 %v1035_v27, %v1034_v26  ;;  %v1004_v40 = vld [vmem:[%s3764_s7 + $0x210] sm:$0xff]  ;;  %v1042_v26 = vld [vmem:[%s3764_s7 + $0x340] sm:$0xff]  ;;  %v1043_v27 = vld [vmem:[%s3764_s7 + $0x348] sm:$0xff] }
 0x20f   :  { %825 = vmatmul.mubr.f32.vlgmr.msra.gmra.mrb[6].mxu0 %v2766_v45  ;;  %896 = vmatmul.mubr.f32.vlgmr.msra.gmra.mrb[6].mxu1 %v2766_v45  ;;  %v974_v45 = vld [vmem:[%s3764_s7 + $0x120] sm:$0xff] }
 0x210   :  { %2136 = vmatpush3.bf16.msra.mxu0 %v2135_v47  ;;  %2168 = vmatpush3.bf16.msra.mxu1 %v2167_v48  ;;  %v2175_v8 = vpack.c.bf16 %v975_v1, %v974_v45  ;;  %v2189_v47 = vpack.c.bf16 %v999_v42, %v998_v41  ;;  %v951_v48 = vld [vmem:[%s3764_s7 + $0x68] sm:$0xff]  ;;  %v1050_v45 = vld [vmem:[%s3764_s7 + $0x380] sm:$0xff]  ;;  %v1005_v41 = vld [vmem:[%s3764_s7 + $0x218] sm:$0xff] }
 0x211   :  { %2138 = vmatprep.subr.bf16.mxu0 %v2137_v51  ;;  %2170 = vmatprep.subr.bf16.mxu1 %v2169_v52  ;;  %v968_v51 = vld [vmem:[%s3764_s7 + $0xf0] sm:$0xff]  ;;  %v969_v52 = vld [vmem:[%s3764_s7 + $0xf8] sm:$0xff]  ;;  %v2159_v54 = vpack.c.bf16 %v951_v48, %v950_v44  ;;  %v2229_v5 = vpack.c.bf16 %v1051_v3, %v1050_v45  ;;  %v1022_v48 = vld [vmem:[%s3764_s7 + $0x2a0] sm:$0xff] }
 0x212   :  { %v2161_v58 = vpack.c.bf16 %v969_v52, %v968_v51  ;;  %v1023_v51 = vld [vmem:[%s3764_s7 + $0x2a8] sm:$0xff]  ;;  %v1054_v52 = vld [vmem:[%s3764_s7 + $0x3a0] sm:$0xff]  ;;  %v1057_v45 = vld [vmem:[%s3764_s7 + $0x3b8] sm:$0xff] }
 0x213   :  { %v1008_v3 = vld [vmem:[%s3764_s7 + $0x230] sm:$0xff] }
 0x214   :  { %2140 = vmatpush3.bf16.msra.mxu0 %v2139_v59  ;;  %2172 = vmatpush3.bf16.msra.mxu1 %v2171_v60  ;;  %v2193_v59 = vpack.c.bf16 %v1001_v56, %v1000_v53  ;;  %v953_v60 = vld [vmem:[%s3764_s7 + $0x78] sm:$0xff]  ;;  %v1055_v53 = vld [vmem:[%s3764_s7 + $0x3a8] sm:$0xff]  ;;  %v1006_v56 = vld [vmem:[%s3764_s7 + $0x220] sm:$0xff] }
 0x215   :  { %2142 = vmatprep.subr.bf16.mxu0 %v2141_v63  ;;  %2174 = vmatprep.subr.bf16.mxu1 %v2173_v0  ;;  %v1018_v63 = vld [vmem:[%s3764_s7 + $0x280] sm:$0xff]  ;;  %v1019_v0 = vld [vmem:[%s3764_s7 + $0x288] sm:$0xff]  ;;  %v2163_v1 = vpack.c.bf16 %v953_v60, %v952_v57 }
 0x216   :  { %v2197_v4 = vpack.c.bf16 %v1019_v0, %v1018_v63  ;;  %v1007_v57 = vld [vmem:[%s3764_s7 + $0x228] sm:$0xff]  ;;  %v1038_v60 = vld [vmem:[%s3764_s7 + $0x320] sm:$0xff]  ;;  %v1025_v63 = vld [vmem:[%s3764_s7 + $0x2b8] sm:$0xff] }
 0x217   :  { %v1056_v0 = vld [vmem:[%s3764_s7 + $0x3b0] sm:$0xff] }
 0x218   :  { %2144 = vmatpush3.bf16.msra.mxu0 %v2143_v7  ;;  %2176 = vmatpush3.bf16.msra.mxu1 %v2175_v8  ;;  %v416_v7 = vlaneseq }
 0x219   :  { %2146 = vmatprep.subr.bf16.mxu0 %v2145_v11  ;;  %2178 = vmatprep.subr.bf16.mxu1 %v2177_v12  ;;  %v3331_v11 = vld [vmem:[%s3763_s6] sm:$0xff] }
 0x21a   :  { %v3324_v8 = vshrl.u32 %v416_v7, 7  ;;  %v2241_v7 = vpack.c.bf16 %v1057_v45, %v1056_v0 }
 0x21c   :  { %2148 = vmatpush3.bf16.msra.mxu0 %v2147_v19  ;;  %2180 = vmatpush3.bf16.msra.mxu1 %v2179_v20  ;;  %v418_v9 = vsub.s32 0, %v3324_v8  ;;  %v426_v10 = vsub.s32 2, %v3324_v8  ;;  %v422_v12 = vsub.s32 1, %v3324_v8  ;;  %v430_v13 = vsub.s32 3, %v3324_v8  ;;  %v1002_v20 = vld [vmem:[%s3764_s7 + $0x200] sm:$0xff] }
 0x21d   :  { %2150 = vmatprep.subr.bf16.mxu0 %v2149_v23  ;;  %2182 = vmatprep.subr.bf16.mxu1 %v2181_v24  ;;  %v2199_v38 = vpack.c.bf16 %v1003_v21, %v1002_v20 }
 0x21e   :  { %v419_v14 = vrot.slane %v3331_v11, %v418_v9  ;;  %v427_v15 = vrot.slane %v3331_v11, %v426_v10  ;;  %v423_v16 = vrot.slane %v3331_v11, %v422_v12  ;;  %v431_v17 = vrot.slane %v3331_v11, %v430_v13 }
 0x220   :  { %2152 = vmatpush3.bf16.msra.mxu0 %v2151_v31  ;;  %2184 = vmatpush3.bf16.msra.mxu1 %v2183_v32  ;;  %v1021_v31 = vld [vmem:[%s3764_s7 + $0x298] sm:$0xff]  ;;  %v1052_v32 = vld [vmem:[%s3764_s7 + $0x390] sm:$0xff] }
 0x221   :  { %2154 = vmatprep.subr.bf16.mxu0 %v2153_v35  ;;  %2186 = vmatprep.subr.bf16.mxu1 %v2185_v36  ;;  %v2233_v44 = vpack.c.bf16 %v1053_v33, %v1052_v32  ;;  %v2247_v33 = vpack.c.bf16 %v1043_v27, %v1042_v26 }
 0x224   :  { %2156 = vmatpush3.bf16.msra.mxu0 %v2155_v43  ;;  %2188 = vmatpush3.bf16.msra.mxu1 %v2187_v6  ;;  %v2201_v6 = vpack.c.bf16 %v1021_v31, %v1020_v28  ;;  %v1028_v28 = vld [vmem:[%s3764_s7 + $0x2d0] sm:$0xff]  ;;  %v1061_v31 = vld [vmem:[%s3764_s7 + $0x3d8] sm:$0xff] }
 0x225   :  { %2158 = vmatprep.subr.bf16.mxu0 %v2157_v46  ;;  %2190 = vmatprep.subr.bf16.mxu1 %v2189_v47  ;;  %v1036_v46 = vld [vmem:[%s3764_s7 + $0x310] sm:$0xff]  ;;  %v1037_v47 = vld [vmem:[%s3764_s7 + $0x318] sm:$0xff] }
 0x228   :  { %2160 = vmatpush3.bf16.msra.mxu0 %v2159_v54  ;;  %2192 = vmatpush3.bf16.msra.mxu1 %v2191_v55  ;;  %v2203_v54 = vpack.c.bf16 %v1005_v41, %v1004_v40  ;;  %v2235_v55 = vpack.c.bf16 %v1037_v47, %v1036_v46  ;;  %v1030_v40 = vld [vmem:[%s3764_s7 + $0x2e0] sm:$0xff]  ;;  %v1031_v41 = vld [vmem:[%s3764_s7 + $0x2e8] sm:$0xff] }
 0x229   :  { %2162 = vmatprep.subr.bf16.mxu0 %v2161_v58  ;;  %2194 = vmatprep.subr.bf16.mxu1 %v2193_v59  ;;  %v2205_v58 = vpack.c.bf16 %v1023_v51, %v1022_v48  ;;  %v2237_v59 = vpack.c.bf16 %v1055_v53, %v1054_v52  ;;  %v438_v48 = vsub.s32 5, %v3324_v8  ;;  %v2221_v51 = vpack.c.bf16 %v1031_v41, %v1030_v40 }
 0x22a   :  { %v446_v53 = vsub.s32 7, %v3324_v8 }
 0x22c   :  { %2164 = vmatpush3.bf16.msra.mxu0 %v2163_v1  ;;  %2196 = vmatpush3.bf16.msra.mxu1 %v2195_v2  ;;  %v2207_v1 = vpack.c.bf16 %v1007_v57, %v1006_v56  ;;  %v2239_v2 = vpack.c.bf16 %v1039_v61, %v1038_v60  ;;  %v1032_v56 = vld [vmem:[%s3764_s7 + $0x2f0] sm:$0xff]  ;;  %v1033_v57 = vld [vmem:[%s3764_s7 + $0x2f8] sm:$0xff] }
 0x22d   :  { %2198 = vmatprep.subr.bf16.mxu0 %v2197_v4  ;;  %2230 = vmatprep.subr.bf16.mxu1 %v2229_v5  ;;  %v1009_v4 = vld [vmem:[%s3764_s7 + $0x238] sm:$0xff]  ;;  %v2209_v5 = vpack.c.bf16 %v1025_v63, %v1024_v62  ;;  %v1016_v62 = vld [vmem:[%s3764_s7 + $0x270] sm:$0xff]  ;;  %v439_v63 = vrot.slane %v3331_v11, %v438_v48 }
 0x22e   :  { %v2211_v20 = vpack.c.bf16 %v1009_v4, %v1008_v3  ;;  %v1049_v3 = vld [vmem:[%s3764_s7 + $0x378] sm:$0xff]  ;;  %v447_v4 = vrot.slane %v3331_v11, %v446_v53 }
 0x2a2   :  { %v542_v18 = vpop.f32.mrb[2].mxu0  ;;  %v613_v19 = vpop.f32.mrb[2].mxu1 }
 0x2a3   :  { %v543_v22 = vadd.f32 %v542_v18, %v419_v14  ;;  %v614_v23 = vadd.f32 %v613_v19, %v427_v15  ;;  %v544_v24 = vpop.f32.mrb[3].mxu0  ;;  %v615_v25 = vpop.f32.mrb[3].mxu1  ;;  %v1040_v14 = vld [vmem:[%s3764_s7 + $0x330] sm:$0xff]  ;;  %v1041_v15 = vld [vmem:[%s3764_s7 + $0x338] sm:$0xff]  ;;  %v1058_v18 = vld [vmem:[%s3764_s7 + $0x3c0] sm:$0xff] }
 0x2a4   :  { %v545_v29 = vadd.f32 %v544_v24, %v423_v16  ;;  %v616_v30 = vadd.f32 %v615_v25, %v431_v17  ;;  %v1026_v16 = vld [vmem:[%s3764_s7 + $0x2c0] sm:$0xff]  ;;  %v1027_v17 = vld [vmem:[%s3764_s7 + $0x2c8] sm:$0xff]  ;;  %v2243_v21 = vpack.c.bf16 %v1041_v15, %v1040_v14 }
 0x2a5   :  { %vm902_vm1 = vcmp.ge.f32.partialorder %v543_v22, 0.0  ;;  %v914_v34 = vmul.f32 0.01, %v543_v22  ;;  %vm904_vm2 = vcmp.ge.f32.partialorder %v614_v23, 0.0  ;;  %v916_v35 = vmul.f32 0.01, %v614_v23 }
 0x2a6   :  { %v915_v36 = vmul.f32 0.01, %v545_v29  ;;  %v917_v37 = vmul.f32 0.01, %v616_v30  ;;  %vm903_vm3 = vcmp.ge.f32.partialorder %v545_v29, 0.0  ;;  %vm905_vm4 = vcmp.ge.f32.partialorder %v616_v30, 0.0 }
 0x2a7   :  { %v926_v49 = vsel %vm902_vm1, %v543_v22, %v914_v34  ;;  %v928_v50 = vsel %vm904_vm2, %v614_v23, %v916_v35  ;;  %v1059_v19 = vld [vmem:[%s3764_s7 + $0x3c8] sm:$0xff]  ;;  %v1010_v22 = vld [vmem:[%s3764_s7 + $0x240] sm:$0xff]  ;;  %v2213_v24 = vpack.c.bf16 %v1027_v17, %v1026_v16  ;;  %v1012_v34 = vld [vmem:[%s3764_s7 + $0x250] sm:$0xff] }
 0x2a8   :  { %v927_v42 = vsel %vm903_vm3, %v545_v29, %v915_v36  ;;  %v929_v43 = vsel %vm905_vm4, %v616_v30, %v917_v37  ;;  %v1011_v23 = vld [vmem:[%s3764_s7 + $0x248] sm:$0xff]  ;;  %v2245_v25 = vpack.c.bf16 %v1059_v19, %v1058_v18  ;;  %v1029_v29 = vld [vmem:[%s3764_s7 + $0x2d8] sm:$0xff]  ;;  %v1060_v30 = vld [vmem:[%s3764_s7 + $0x3d0] sm:$0xff] }
 0x2a9   :  { %1201 = vmatprep.mubr.f32.mxu0 %v927_v42  ;;  %1271 = vmatprep.mubr.f32.mxu1 %v929_v43  ;;  %v2215_v32 = vpack.c.bf16 %v1011_v23, %v1010_v22  ;;  %v1013_v35 = vld [vmem:[%s3764_s7 + $0x258] sm:$0xff]  ;;  %v2217_v36 = vpack.c.bf16 %v1029_v29, %v1028_v28  ;;  %v2249_v37 = vpack.c.bf16 %v1061_v31, %v1060_v30  ;;  %v1062_v42 = vld [vmem:[%s3764_s7 + $0x3e0] sm:$0xff]  ;;  %v1063_v43 = vld [vmem:[%s3764_s7 + $0x3e8] sm:$0xff] }
 0x2aa   :  { %1202 = vmatmul.mubr.f32.vlgmr.msra.gmra.mrb[8].mxu0 %v926_v49  ;;  %1272 = vmatmul.mubr.f32.vlgmr.msra.gmra.mrb[8].mxu1 %v928_v50  ;;  %v2219_v46 = vpack.c.bf16 %v1013_v35, %v1012_v34  ;;  %v1014_v49 = vld [vmem:[%s3764_s7 + $0x260] sm:$0xff]  ;;  %v1015_v50 = vld [vmem:[%s3764_s7 + $0x268] sm:$0xff]  ;;  %v2253_v52 = vpack.c.bf16 %v1063_v43, %v1062_v42  ;;  %v1084_v30 = vld [vmem:[%s3764_s7 + $0x490] sm:$0xff] }
 0x2ab   :  { %2200 = vmatpush3.bf16.msra.mxu0 %v2199_v38  ;;  %2232 = vmatpush3.bf16.msra.mxu1 %v2231_v39  ;;  %v1044_v38 = vld [vmem:[%s3764_s7 + $0x350] sm:$0xff]  ;;  %v1045_v39 = vld [vmem:[%s3764_s7 + $0x358] sm:$0xff]  ;;  %v2223_v0 = vpack.c.bf16 %v1015_v50, %v1014_v49  ;;  %v1082_v14 = vld [vmem:[%s3764_s7 + $0x480] sm:$0xff] }
 0x2ac   :  { %2202 = vmatprep.subr.bf16.mxu0 %v2201_v6  ;;  %2234 = vmatprep.subr.bf16.mxu1 %v2233_v44  ;;  %v434_v6 = vsub.s32 4, %v3324_v8  ;;  %v442_v44 = vsub.s32 6, %v3324_v8  ;;  %v2251_v47 = vpack.c.bf16 %v1045_v39, %v1044_v38  ;;  %v1083_v15 = vld [vmem:[%s3764_s7 + $0x488] sm:$0xff]  ;;  %v1114_v16 = vld [vmem:[%s3764_s7 + $0x580] sm:$0xff]  ;;  %v1085_v34 = vld [vmem:[%s3764_s7 + $0x498] sm:$0xff] }
 0x2ad   :  { %v1115_v17 = vld [vmem:[%s3764_s7 + $0x588] sm:$0xff]  ;;  %v2261_v27 = vpack.c.bf16 %v1083_v15, %v1082_v14  ;;  %v1098_v28 = vld [vmem:[%s3764_s7 + $0x500] sm:$0xff]  ;;  %v1116_v35 = vld [vmem:[%s3764_s7 + $0x590] sm:$0xff]  ;;  %v2265_v43 = vpack.c.bf16 %v1085_v34, %v1084_v30 }
 0x2ae   :  { %v435_v60 = vrot.slane %v3331_v11, %v434_v6  ;;  %v443_v61 = vrot.slane %v3331_v11, %v442_v44  ;;  %v1067_v22 = vld [vmem:[%s3764_s7 + $0x408] sm:$0xff]  ;;  %v1068_v6 = vld [vmem:[%s3764_s7 + $0x410] sm:$0xff]  ;;  %v1069_v44 = vld [vmem:[%s3764_s7 + $0x418] sm:$0xff] }
 0x2af   :  { %2204 = vmatpush3.bf16.msra.mxu0 %v2203_v54  ;;  %2236 = vmatpush3.bf16.msra.mxu1 %v2235_v55  ;;  %v1046_v54 = vld [vmem:[%s3764_s7 + $0x360] sm:$0xff]  ;;  %v1047_v55 = vld [vmem:[%s3764_s7 + $0x368] sm:$0xff]  ;;  %v1100_v49 = vld [vmem:[%s3764_s7 + $0x510] sm:$0xff] }
 0x2b0   :  { %2206 = vmatprep.subr.bf16.mxu0 %v2205_v58  ;;  %2238 = vmatprep.subr.bf16.mxu1 %v2237_v59  ;;  %v1064_v58 = vld [vmem:[%s3764_s7 + $0x3f0] sm:$0xff]  ;;  %v1065_v59 = vld [vmem:[%s3764_s7 + $0x3f8] sm:$0xff]  ;;  %v2255_v45 = vpack.c.bf16 %v1047_v55, %v1046_v54  ;;  %v1099_v29 = vld [vmem:[%s3764_s7 + $0x508] sm:$0xff] }
 0x2b1   :  { %v2295_v42 = vpack.c.bf16 %v1099_v29, %v1098_v28  ;;  %v1101_v50 = vld [vmem:[%s3764_s7 + $0x518] sm:$0xff]  ;;  %v1087_v54 = vld [vmem:[%s3764_s7 + $0x4a8] sm:$0xff]  ;;  %v1118_v55 = vld [vmem:[%s3764_s7 + $0x5a0] sm:$0xff] }
 0x2b2   :  { %v1073_v14 = vld [vmem:[%s3764_s7 + $0x438] sm:$0xff]  ;;  %v1106_v28 = vld [vmem:[%s3764_s7 + $0x540] sm:$0xff]  ;;  %v1107_v29 = vld [vmem:[%s3764_s7 + $0x548] sm:$0xff] }
 0x2b3   :  { %2208 = vmatpush3.bf16.msra.mxu0 %v2207_v1  ;;  %2240 = vmatpush3.bf16.msra.mxu1 %v2239_v2  ;;  %v1017_v1 = vld [vmem:[%s3764_s7 + $0x278] sm:$0xff]  ;;  %v1048_v2 = vld [vmem:[%s3764_s7 + $0x370] sm:$0xff] }
 0x2b4   :  { %2210 = vmatprep.subr.bf16.mxu0 %v2209_v5  ;;  %2242 = vmatprep.subr.bf16.mxu1 %v2241_v7  ;;  %v2225_v5 = vpack.c.bf16 %v1033_v57, %v1032_v56  ;;  %v2257_v7 = vpack.c.bf16 %v1065_v59, %v1064_v58  ;;  %v2227_v19 = vpack.c.bf16 %v1017_v1, %v1016_v62  ;;  %v1119_v56 = vld [vmem:[%s3764_s7 + $0x5a8] sm:$0xff]  ;;  %v1070_v59 = vld [vmem:[%s3764_s7 + $0x420] sm:$0xff]  ;;  %v1089_v1 = vld [vmem:[%s3764_s7 + $0x4b8] sm:$0xff] }
 0x2b5   :  { %v2267_v57 = vpack.c.bf16 %v1069_v44, %v1068_v6  ;;  %v2299_v58 = vpack.c.bf16 %v1101_v50, %v1100_v49  ;;  %v2301_v62 = vpack.c.bf16 %v1119_v56, %v1118_v55  ;;  %v1092_v30 = vld [vmem:[%s3764_s7 + $0x4d0] sm:$0xff]  ;;  %v1126_v6 = vld [vmem:[%s3764_s7 + $0x5e0] sm:$0xff]  ;;  %v1127_v44 = vld [vmem:[%s3764_s7 + $0x5e8] sm:$0xff] }
 0x2b6   :  { %v1078_v49 = vld [vmem:[%s3764_s7 + $0x460] sm:$0xff]  ;;  %v1079_v50 = vld [vmem:[%s3764_s7 + $0x468] sm:$0xff]  ;;  %v1096_v55 = vld [vmem:[%s3764_s7 + $0x4f0] sm:$0xff] }
 0x2b7   :  { %2212 = vmatpush3.bf16.msra.mxu0 %v2211_v20  ;;  %2244 = vmatpush3.bf16.msra.mxu1 %v2243_v21  ;;  %v2259_v20 = vpack.c.bf16 %v1049_v3, %v1048_v2  ;;  %v1066_v21 = vld [vmem:[%s3764_s7 + $0x400] sm:$0xff]  ;;  %v1120_v2 = vld [vmem:[%s3764_s7 + $0x5b0] sm:$0xff]  ;;  %v1121_v3 = vld [vmem:[%s3764_s7 + $0x5b8] sm:$0xff] }
 0x2b8   :  { %2214 = vmatprep.subr.bf16.mxu0 %v2213_v24  ;;  %2246 = vmatprep.subr.bf16.mxu1 %v2245_v25  ;;  %v2263_v41 = vpack.c.bf16 %v1067_v22, %v1066_v21  ;;  %v1123_v21 = vld [vmem:[%s3764_s7 + $0x5c8] sm:$0xff]  ;;  %v1097_v56 = vld [vmem:[%s3764_s7 + $0x4f8] sm:$0xff] }
 0x2bb   :  { %2216 = vmatpush3.bf16.msra.mxu0 %v2215_v32  ;;  %2248 = vmatpush3.bf16.msra.mxu1 %v2247_v33  ;;  %v2293_v33 = vpack.c.bf16 %v1115_v17, %v1114_v16  ;;  %v2305_v16 = vpack.c.bf16 %v1121_v3, %v1120_v2  ;;  %v1104_v17 = vld [vmem:[%s3764_s7 + $0x530] sm:$0xff]  ;;  %v1113_v2 = vld [vmem:[%s3764_s7 + $0x578] sm:$0xff] }
 0x2bc   :  { %2218 = vmatprep.subr.bf16.mxu0 %v2217_v36  ;;  %2250 = vmatprep.subr.bf16.mxu1 %v2249_v37  ;;  %v1117_v36 = vld [vmem:[%s3764_s7 + $0x598] sm:$0xff] }
 0x2bd   :  { %v2297_v48 = vpack.c.bf16 %v1117_v36, %v1116_v35  ;;  %v2311_v35 = vpack.c.bf16 %v1107_v29, %v1106_v28  ;;  %v1076_v36 = vld [vmem:[%s3764_s7 + $0x450] sm:$0xff] }
 0x2bf   :  { %2220 = vmatpush3.bf16.msra.mxu0 %v2219_v46  ;;  %2252 = vmatpush3.bf16.msra.mxu1 %v2251_v47 }
 0x2c0   :  { %2222 = vmatprep.subr.bf16.mxu0 %v2221_v51  ;;  %2254 = vmatprep.subr.bf16.mxu1 %v2253_v52  ;;  %v1086_v51 = vld [vmem:[%s3764_s7 + $0x4a0] sm:$0xff] }
 0x2c2   :  { %v684_v18 = vpop.f32.mrb[4].mxu0  ;;  %v755_v11 = vpop.f32.mrb[4].mxu1 }
 0x2c3   :  { %v685_v23 = vadd.f32 %v684_v18, %v435_v60  ;;  %v756_v24 = vadd.f32 %v755_v11, %v443_v61  ;;  %v686_v25 = vpop.f32.mrb[5].mxu0  ;;  %v757_v26 = vpop.f32.mrb[5].mxu1  ;;  %2224 = vmatpush3.bf16.msra.mxu0 %v2223_v0  ;;  %2256 = vmatpush3.bf16.msra.mxu1 %v2255_v45  ;;  %v1071_v60 = vld [vmem:[%s3764_s7 + $0x428] sm:$0xff]  ;;  %v2269_v61 = vpack.c.bf16 %v1087_v54, %v1086_v51  ;;  %v1088_v45 = vld [vmem:[%s3764_s7 + $0x4b0] sm:$0xff]  ;;  %v1105_v18 = vld [vmem:[%s3764_s7 + $0x538] sm:$0xff] }
 0x2c4   :  { %v687_v31 = vadd.f32 %v686_v25, %v439_v63  ;;  %v758_v32 = vadd.f32 %v757_v26, %v447_v4  ;;  %2226 = vmatprep.subr.bf16.mxu0 %v2225_v5  ;;  %2258 = vmatprep.subr.bf16.mxu1 %v2257_v7  ;;  %v1102_v63 = vld [vmem:[%s3764_s7 + $0x520] sm:$0xff]  ;;  %v1103_v0 = vld [vmem:[%s3764_s7 + $0x528] sm:$0xff]  ;;  %v2271_v4 = vpack.c.bf16 %v1071_v60, %v1070_v59  ;;  %v1072_v7 = vld [vmem:[%s3764_s7 + $0x430] sm:$0xff] }
 0x2c5   :  { %vm906_vm5 = vcmp.ge.f32.partialorder %v685_v23, 0.0  ;;  %v918_v37 = vmul.f32 0.01, %v685_v23  ;;  %vm908_vm6 = vcmp.ge.f32.partialorder %v756_v24, 0.0  ;;  %v920_v38 = vmul.f32 0.01, %v756_v24 }
 0x2c6   :  { %v919_v39 = vmul.f32 0.01, %v687_v31  ;;  %v921_v40 = vmul.f32 0.01, %v758_v32  ;;  %vm907_vm7 = vcmp.ge.f32.partialorder %v687_v31, 0.0  ;;  %vm909_vm8 = vcmp.ge.f32.partialorder %v758_v32, 0.0 }
 0x2c7   :  { %2228 = vmatpush3.bf16.msra.mxu0 %v2227_v19  ;;  %2260 = vmatpush3.bf16.msra.mxu1 %v2259_v20  ;;  %v930_v52 = vsel %vm906_vm5, %v685_v23, %v918_v37  ;;  %v932_v53 = vsel %vm908_vm6, %v756_v24, %v920_v38  ;;  %v2303_v5 = vpack.c.bf16 %v1103_v0, %v1102_v63  ;;  %v1090_v11 = vld [vmem:[%s3764_s7 + $0x4c0] sm:$0xff]  ;;  %v1091_v19 = vld [vmem:[%s3764_s7 + $0x4c8] sm:$0xff]  ;;  %v1077_v37 = vld [vmem:[%s3764_s7 + $0x458] sm:$0xff] }
 0x2c8   :  { %v931_v46 = vsel %vm907_vm7, %v687_v31, %v919_v39  ;;  %v933_v47 = vsel %vm909_vm8, %v758_v32, %v921_v40  ;;  %2262 = vmatprep.subr.bf16.mxu0 %v2261_v27  ;;  %2294 = vmatprep.subr.bf16.mxu1 %v2293_v33  ;;  %v2273_v15 = vpack.c.bf16 %v1089_v1, %v1088_v45  ;;  %v1122_v20 = vld [vmem:[%s3764_s7 + $0x5c0] sm:$0xff]  ;;  %v1075_v25 = vld [vmem:[%s3764_s7 + $0x448] sm:$0xff]  ;;  %v1093_v31 = vld [vmem:[%s3764_s7 + $0x4d8] sm:$0xff] }
 0x2c9   :  { %1341 = vmatprep.mubr.f32.mxu0 %v931_v46  ;;  %1411 = vmatprep.mubr.f32.mxu1 %v933_v47  ;;  %v2275_v22 = vpack.c.bf16 %v1073_v14, %v1072_v7  ;;  %v2307_v23 = vpack.c.bf16 %v1105_v18, %v1104_v17  ;;  %v1074_v24 = vld [vmem:[%s3764_s7 + $0x440] sm:$0xff]  ;;  %v2277_v26 = vpack.c.bf16 %v1091_v19, %v1090_v11  ;;  %v1124_v32 = vld [vmem:[%s3764_s7 + $0x5d0] sm:$0xff]  ;;  %v1125_v33 = vld [vmem:[%s3764_s7 + $0x5d8] sm:$0xff] }
 0x2ca   :  { %1342 = vmatmul.mubr.f32.vlgmr.msra.gmra.mrb[10].mxu0 %v930_v52  ;;  %1412 = vmatmul.mubr.f32.vlgmr.msra.gmra.mrb[10].mxu1 %v932_v53  ;;  %v2309_v27 = vpack.c.bf16 %v1123_v21, %v1122_v20  ;;  %v2279_v34 = vpack.c.bf16 %v1075_v25, %v1074_v24  ;;  %v2281_v38 = vpack.c.bf16 %v1093_v31, %v1092_v30  ;;  %v1108_v40 = vld [vmem:[%s3764_s7 + $0x550] sm:$0xff]  ;;  %v1110_v53 = vld [vmem:[%s3764_s7 + $0x560] sm:$0xff]  ;;  %v1111_v54 = vld [vmem:[%s3764_s7 + $0x568] sm:$0xff] }
 0x2cb   :  { %2264 = vmatpush3.bf16.msra.mxu0 %v2263_v41  ;;  %2296 = vmatpush3.bf16.msra.mxu1 %v2295_v42  ;;  %v2313_v39 = vpack.c.bf16 %v1125_v33, %v1124_v32  ;;  %v1109_v41 = vld [vmem:[%s3764_s7 + $0x558] sm:$0xff]  ;;  %v1094_v42 = vld [vmem:[%s3764_s7 + $0x4e0] sm:$0xff]  ;;  %v2283_v46 = vpack.c.bf16 %v1077_v37, %v1076_v36  ;;  %v2317_v52 = vpack.c.bf16 %v1127_v44, %v1126_v6  ;;  %v1080_v0 = vld [vmem:[%s3764_s7 + $0x470] sm:$0xff] }
 0x2cc   :  { %2266 = vmatprep.subr.bf16.mxu0 %v2265_v43  ;;  %2298 = vmatprep.subr.bf16.mxu1 %v2297_v48  ;;  %v1095_v43 = vld [vmem:[%s3764_s7 + $0x4e8] sm:$0xff]  ;;  %v2315_v47 = vpack.c.bf16 %v1109_v41, %v1108_v40  ;;  %v2319_v63 = vpack.c.bf16 %v1111_v54, %v1110_v53  ;;  %v1081_v45 = vld [vmem:[%s3764_s7 + $0x478] sm:$0xff] }
 0x2cd   :  { %v413_v48 = vld [vmem:[%s3763_s6 + $0x8] sm:$0xf]  ;;  %v2285_v51 = vpack.c.bf16 %v1095_v43, %v1094_v42 }
 0x2ce   :  { %v451_v59 = vrot.slane %v413_v48, %v418_v9  ;;  %v459_v60 = vrot.slane %v413_v48, %v426_v10  ;;  %v463_v9 = vrot.slane %v413_v48, %v430_v13  ;;  %v2289_v10 = vpack.c.bf16 %v1097_v56, %v1096_v55 }
 0x2cf   :  { %2268 = vmatpush3.bf16.msra.mxu0 %v2267_v57  ;;  %2300 = vmatpush3.bf16.msra.mxu1 %v2299_v58  ;;  %v1128_v57 = vld [vmem:[%s3764_s7 + $0x5f0] sm:$0xff]  ;;  %v1129_v58 = vld [vmem:[%s3764_s7 + $0x5f8] sm:$0xff] }
 0x2d0   :  { %2270 = vmatprep.subr.bf16.mxu0 %v2269_v61  ;;  %2302 = vmatprep.subr.bf16.mxu1 %v2301_v62  ;;  %v455_v61 = vrot.slane %v413_v48, %v422_v12  ;;  %v2287_v62 = vpack.c.bf16 %v1079_v50, %v1078_v49  ;;  %v2321_v1 = vpack.c.bf16 %v1129_v58, %v1128_v57  ;;  %v1112_v12 = vld [vmem:[%s3764_s7 + $0x570] sm:$0xff] }
 0x2d1   :  { %v2323_v8 = vpack.c.bf16 %v1113_v2, %v1112_v12 }
 0x2d3   :  { %2272 = vmatpush3.bf16.msra.mxu0 %v2271_v4  ;;  %2304 = vmatpush3.bf16.msra.mxu1 %v2303_v5  ;;  %v2291_v5 = vpack.c.bf16 %v1081_v45, %v1080_v0 }
 0x2d4   :  { %2274 = vmatprep.subr.bf16.mxu0 %v2273_v15  ;;  %2306 = vmatprep.subr.bf16.mxu1 %v2305_v16 }
 0x2d7   :  { %2276 = vmatpush3.bf16.msra.mxu0 %v2275_v22  ;;  %2308 = vmatpush3.bf16.msra.mxu1 %v2307_v23 }
 0x2d8   :  { %2278 = vmatprep.subr.bf16.mxu0 %v2277_v26  ;;  %2310 = vmatprep.subr.bf16.mxu1 %v2309_v27  ;;  %v1578_v27 = vld [vmem:[%s3765_s8] ss:$0 sm:$0xff]  ;;  %s2356_s8 = smov [#allocation2]  }
 0x2d9   :  { %s1568_s23 = sshll.u32 %s2356_s8, 4  ;;  %s1569_s23 = int_to_ptr.vmem [resolvable:$true] %s1568_s23 }
 0x2da   :  { %s2329_s24 = scalar_lea.vmem %s1569_s23, 128  ;;  %p2334_p1 = scmp.lt.s32.totalorder %s1569_s23, %s1569_s23 }
 0x2db   :  { %2280 = vmatpush3.bf16.msra.mxu0 %v2279_v34  ;;  %2312 = vmatpush3.bf16.msra.mxu1 %v2311_v35  ;;  %p2330_p0 = scmp.ne.s32.totalorder %s1569_s23, %s2329_s24  ;;  %p2335_p2 = scmp.lt.s32.totalorder %s2329_s24, %s2329_s24 }
 0x2dc   :  { %2282 = vmatprep.subr.bf16.mxu0 %v2281_v38  ;;  %2314 = vmatprep.subr.bf16.mxu1 %v2313_v39 }
 0x2dd   :  { %p2336_p3 = por %p2335_p2, %p2334_p1 }
 0x2df   :  { %2284 = vmatpush3.bf16.msra.mxu0 %v2283_v46  ;;  %2316 = vmatpush3.bf16.msra.mxu1 %v2315_v47  ;;  %p2337_p4 = pnand %p2336_p3, %p2330_p0 }
 0x2e0   :  { %2286 = vmatprep.subr.bf16.mxu0 %v2285_v51  ;;  %2318 = vmatprep.subr.bf16.mxu1 %v2317_v52 }
 0x2e2   :  { %v826_v3 = vpop.f32.mrb[6].mxu0  ;;  %v897_v4 = vpop.f32.mrb[6].mxu1 }
 0x2e3   :  { %v827_v7 = vadd.f32 %v826_v3, %v451_v59  ;;  %v898_v14 = vadd.f32 %v897_v4, %v459_v60  ;;  %v828_v15 = vpop.f32.mrb[7].mxu0  ;;  %v899_v16 = vpop.f32.mrb[7].mxu1  ;;  %2288 = vmatpush3.bf16.msra.mxu0 %v2287_v62  ;;  %2320 = vmatpush3.bf16.msra.mxu1 %v2319_v63 }
 0x2e4   :  { %v829_v13 = vadd.f32 %v828_v15, %v455_v61  ;;  %v900_v17 = vadd.f32 %v899_v16, %v463_v9  ;;  %2290 = vmatprep.subr.bf16.mxu0 %v2289_v10  ;;  %2322 = vmatprep.subr.bf16.mxu1 %v2321_v1 }
 0x2e5   :  { %vm910_vm9 = vcmp.ge.f32.partialorder %v827_v7, 0.0  ;;  %v922_v18 = vmul.f32 0.01, %v827_v7  ;;  %vm912_vm10 = vcmp.ge.f32.partialorder %v898_v14, 0.0  ;;  %v924_v11 = vmul.f32 0.01, %v898_v14 }
 0x2e6   :  { %v923_v19 = vmul.f32 0.01, %v829_v13  ;;  %v925_v20 = vmul.f32 0.01, %v900_v17  ;;  %vm911_vm11 = vcmp.ge.f32.partialorder %v829_v13, 0.0  ;;  %vm913_vm12 = vcmp.ge.f32.partialorder %v900_v17, 0.0 }
 0x2e7   :  { %2292 = vmatpush3.bf16.msra.mxu0 %v2291_v5  ;;  %2324 = vmatpush3.bf16.msra.mxu1 %v2323_v8  ;;  %v934_v23 = vsel %vm910_vm9, %v827_v7, %v922_v18  ;;  %v936_v24 = vsel %vm912_vm10, %v898_v14, %v924_v11 }
 0x2e8   :  { %v935_v21 = vsel %vm911_vm11, %v829_v13, %v923_v19  ;;  %v937_v22 = vsel %vm913_vm12, %v900_v17, %v925_v20 }
 0x2e9   :  { %1481 = vmatprep.mubr.f32.mxu0 %v935_v21  ;;  %1551 = vmatprep.mubr.f32.mxu1 %v937_v22 }
 0x2ea   :  { %1482 = vmatmul.mubr.f32.vlgmr.msra.gmra.mrb[12].mxu0 %v934_v23  ;;  %1552 = vmatmul.mubr.f32.vlgmr.msra.gmra.mrb[12].mxu1 %v936_v24 }
 0x37d   :  { %v1645_v25 = vpop.f32.mrb[8].mxu0  ;;  %v1680_v26 = vpop.f32.mrb[8].mxu1 }
 0x37e   :  { %v1646_v28 = vpop.f32.mrb[9].mxu0  ;;  %v1681_v29 = vpop.f32.mrb[9].mxu1 }
 0x37f   :  { %v1647_v30 = vadd.f32 %v1646_v28, %v1645_v25  ;;  %v1682_v31 = vadd.f32 %v1681_v29, %v1680_v26 }
 0x381   :  { %v1204_v32 = vadd.f32 %v1647_v30, %v1578_v27 }
 0x383   :  { %v1274_v33 = vadd.f32 %v1682_v31, %v1204_v32 }
 0x39d   :  { %v1715_v34 = vpop.f32.mrb[10].mxu0  ;;  %v1750_v35 = vpop.f32.mrb[10].mxu1 }
 0x39e   :  { %v1716_v36 = vpop.f32.mrb[11].mxu0  ;;  %v1751_v37 = vpop.f32.mrb[11].mxu1 }
 0x39f   :  { %v1717_v38 = vadd.f32 %v1716_v36, %v1715_v34  ;;  %v1752_v39 = vadd.f32 %v1751_v37, %v1750_v35 }
 0x3a1   :  { %v1344_v40 = vadd.f32 %v1717_v38, %v1274_v33 }
 0x3a3   :  { %v1414_v41 = vadd.f32 %v1752_v39, %v1344_v40 }
 0x3bd   :  { %v1785_v42 = vpop.f32.mrb[12].mxu0  ;;  %v1820_v43 = vpop.f32.mrb[12].mxu1 }
 0x3be   :  { %v1786_v6 = vpop.f32.mrb[13].mxu0  ;;  %v1821_v44 = vpop.f32.mrb[13].mxu1 }
 0x3bf   :  { %v1787_v46 = vadd.f32 %v1786_v6, %v1785_v42  ;;  %v1822_v47 = vadd.f32 %v1821_v44, %v1820_v43 }
 0x3c1   :  { %v1484_v48 = vadd.f32 %v1787_v46, %v1414_v41 }
 0x3c3   :  { %v1554_v49 = vadd.f32 %v1822_v47, %v1484_v48 }
 0x3c5   :  { %v1558_v50 = vmul.f32 0.01, %v1554_v49  ;;  %vm1557_vm13 = vcmp.ge.f32.partialorder %v1554_v49, 0.0 }
 0x3c7   :  { %v1559_v51 = vsel %vm1557_vm13, %v1554_v49, %v1558_v50 }
 0x3c8   :  { %1561 = vst.msk [vmem:[#allocation2] sm:$0xff] %vm1560_vm14, %v1559_v51 }
 0x3c9   :  { %2340 = shalt.err (!%p2337_p4)
}
 0x3ca   :  { %s2341_s1 = scalar_lea.hbm %s3766_s9, 128 }
 0x3cb   :  { %p2342_p5 = scmp.ne.s32.totalorder %s3766_s9, %s2341_s1  ;;  %p2345_p6 = scmp.lt.u32.totalorder %s2341_s1, %s3766_s9 }
 0x3cd   :  { %p2347_p7 = pnand %p2345_p6, %p2342_p5 }
 0x3cf   :  { %2350 = shalt.err (!%p2347_p7)
}
 0x3d0   :  { %1571 = dma.vmem_to_hbm [thread:$0]  %s1569_s23, 128, %s3766_s9, [#allocation3]  }
 0x3d1   :  { %2351 = dma.done.wait [#allocation3], 128  }
 0x3d2   :  { %2352 = vsyncadd [#allocation3], 4294967168 }
 0x3d3   :  { %1575 = vsyncpa [#allocation3], 1 }

</bundles_post_ra>
